<compile_context>
chip_gen: v5e
topology: v5e:2x2
jax: 0.10.0
libtpu: 0.0.40
codegen_flags: <defaults>
</compile_context>

<pallas_src>
import jax
import jax.numpy as jnp
from jax import lax
from jax.experimental import pallas as pl
from jax.experimental.pallas import tpu as pltpu

OVERLAP_RANGE = (25.0, 30.0, 35.0)
LANE = 128


def _round_up(x, m):
    return ((x + m - 1) // m) * m


# ---------------------------------------------------------------------------
# 1) MSE term: tiled, pipelined, scalar accumulation across an "arbitrary" axis
# ---------------------------------------------------------------------------
def _make_mse_kernel(inv_total):
    def kernel(p_ref, t_ref, o_ref, acc_ref):
        i = pl.program_id(0)

        @pl.when(i == 0)
        def _init():
            acc_ref[...] = jnp.zeros_like(acc_ref)

        d = p_ref[...] - t_ref[...]
        acc_ref[...] += jnp.reshape(jnp.sum(d * d), (1, 1))

        @pl.when(i == pl.num_programs(0) - 1)
        def _finalize():
            o_ref[...] = acc_ref[...] * jnp.float32(inv_total)

    return kernel


def _mse_mean(pred_flat, targ_flat):
    total = int(pred_flat.shape[0])
    rows = -(-total // LANE)
    tile_rows = 512 if rows >= 512 else max(8, _round_up(rows, 8))
    rows_p = _round_up(rows, tile_rows)
    pad = rows_p * LANE - total
    pf = jnp.pad(pred_flat, (0, pad)).reshape(rows_p, LANE)
    tf = jnp.pad(targ_flat, (0, pad)).reshape(rows_p, LANE)

    out = pl.pallas_call(
        _make_mse_kernel(1.0 / float(total)),
        out_shape=jax.ShapeDtypeStruct((1, 1), jnp.float32),
        grid_spec=pltpu.PrefetchScalarGridSpec(
            num_scalar_prefetch=0,
            grid=(rows_p // tile_rows,),
            in_specs=[pl.BlockSpec((tile_rows, LANE), lambda i: (i, 0)),
                      pl.BlockSpec((tile_rows, LANE), lambda i: (i, 0))],
            out_specs=pl.BlockSpec((1, 1), lambda i: (0, 0)),
            scratch_shapes=[pltpu.VMEM((1, 1), jnp.float32)]),
        compiler_params=pltpu.CompilerParams(
            dimension_semantics=("arbitrary",),
            # fits double-buffered tiles with plenty of headroom on v7x's 64 MiB
            vmem_limit_bytes=32 * 1024 * 1024),
    )(pf, tf)
    return out[0, 0]


# ---------------------------------------------------------------------------
# 2) Contrastive term: one dense MXU similarity matrix per batch element
#    aux rows: 0 = x, 1 = y, 2 = label, 3 = frame index; padded entries are -1.
# ---------------------------------------------------------------------------
def _make_contrastive_kernel(thr2):
    def kernel(feat_ref, aux_ref, out_ref):
        feat = feat_ref[0]                               # (LNp, Cp) bf16
        aux = aux_ref[0]                                 # (8, LNp)  f32

        # F.normalize(dim=-1, eps=1e-12) == x * rsqrt(max(|x|^2, eps^2))
        f32 = feat.astype(jnp.float32)
        ssq = jnp.sum(f32 * f32, axis=-1, keepdims=True)
        fn = (f32 * lax.rsqrt(jnp.maximum(ssq, 1e-24))).astype(jnp.bfloat16)

        # Single lane-dense MXU matmul (bf16 in, f32 accumulate) covering all
        # four temporal shifts (l=0 self-similarity computed only once).
        sim = lax.dot_general(fn, fn, (((1,), (1,)), ((), ())),
                              preferred_element_type=jnp.float32)   # (LNp, LNp)

        aux_t = aux.T                                    # (LNp, 8)
        cx_c, cy_c, lab_c, fr_c = (aux[0:1, :], aux[1:2, :],
                                   aux[2:3, :], aux[3:4, :])        # (1, LNp)
        cx_r, cy_r, lab_r, fr_r = (aux_t[:, 0:1], aux_t[:, 1:2],
                                   aux_t[:, 2:3], aux_t[:, 3:4])    # (LNp, 1)

        dx = cx_r - cx_c
        dy = cy_r - cy_c
        dist2 = dx * dx + dy * dy                        # squared compare, no sqrt
        valid = jnp.logical_not(jnp.logical_or(cx_r < 0.0, cx_c < 0.0))
        match = jnp.where(lab_r == lab_c, 1.0, 0.0)
        diff2 = (sim - match) ** 2                       # shared across shifts
        shift = fr_c - fr_r                              # frame offset (col - row)

        num_rows = []
        den_rows = []
        for l in range(4):
            sel = jnp.logical_and(
                shift == jnp.float32(l),
                jnp.logical_and(dist2 < jnp.float32(thr2[l]), valid))
            num_rows.append(jnp.sum(jnp.where(sel, diff2, 0.0),
                                    axis=0, keepdims=True))
            den_rows.append(jnp.sum(jnp.where(sel, 1.0, 0.0),
                                    axis=0, keepdims=True))

        # lane-dense (1, 8, LNp) output: rows 0-3 numerators, 4-7 denominators
        out_ref[...] = jnp.concatenate(num_rows + den_rows, axis=0)[None]

    return kernel


def _contrastive_term(selected, x, y, label_id):
    B, L, N, C = selected.shape
    LN = L * N
    LNp = _round_up(LN, LANE)
    Cp = _round_up(C, LANE)

    feat = jnp.zeros((B, LNp, Cp), jnp.bfloat16)
    feat = feat.at[:, :LN, :C].set(selected.reshape(B, LN, C).astype(jnp.bfloat16))

    frame = jnp.broadcast_to(
        jnp.arange(L, dtype=jnp.float32)[None, :, None], (B, L, N)).reshape(B, LN)
    aux = jnp.full((B, 8, LNp), -1.0, jnp.float32)   # pad rows flagged via x < 0
    aux = aux.at[:, 0, :LN].set(x.reshape(B, LN).astype(jnp.float32))
    aux = aux.at[:, 1, :LN].set(y.reshape(B, LN).astype(jnp.float32))
    aux = aux.at[:, 2, :LN].set(label_id.reshape(B, LN).astype(jnp.float32))
    aux = aux.at[:, 3, :LN].set(frame)

    thr = (OVERLAP_RANGE[0], OVERLAP_RANGE[0], OVERLAP_RANGE[1], OVERLAP_RANGE[2])
    thr2 = tuple(float(t) * float(t) for t in thr)

    part = pl.pallas_call(
        _make_contrastive_kernel(thr2),
        out_shape=jax.ShapeDtypeStruct((B, 8, LNp), jnp.float32),
        grid_spec=pltpu.PrefetchScalarGridSpec(
            num_scalar_prefetch=0,
            grid=(B,),
            in_specs=[pl.BlockSpec((1, LNp, Cp), lambda b: (b, 0, 0)),
                      pl.BlockSpec((1, 8, LNp), lambda b: (b, 0, 0))],
            out_specs=pl.BlockSpec((1, 8, LNp), lambda b: (b, 0, 0))),
        compiler_params=pltpu.CompilerParams(
            dimension_semantics=("parallel",),
            vmem_limit_bytes=32 * 1024 * 1024),
    )(feat, aux)

    s = jnp.sum(part, axis=(0, 2))   # (8,): numerators [0:4], denominators [4:8]
    # NOTE: a shift term with zero in-range pairs divides by 0 (NaN), exactly like
    # `tensor[mask].mean()` on an empty selection in the PyTorch reference.
    return jnp.sum(s[0:4] / s[4:8]) * 0.25


# ---------------------------------------------------------------------------
# Public forward pass
# ---------------------------------------------------------------------------
def contrastive_loss(predicts, feature, pre_coord, targets, label_id):
    B, C, L, H, W = feature.shape
    _, Lc, N, _ = pre_coord.shape

    # --- glue: channel-last gather so each particle is a unit-stride C-row ---
    # TODO(synk): the data-dependent gather itself stays in XLA; a Pallas
    # scalar-prefetch DMA gather would need one tiny DMA per particle row.
    featc = jnp.transpose(feature, (0, 2, 3, 4, 1))          # (B, L, H, W, C)
    idx = jnp.arange(B * Lc * N).reshape(B, Lc, N)
    batch_idx = idx // (Lc * N)
    length_idx = idx % Lc            # exactly as written in the reference module
    x = pre_coord[..., 0]
    y = pre_coord[..., 1]
    xw = jnp.where(x < 0, x + W, x)  # emulate torch negative-index wrapping
    yw = jnp.where(y < 0, y + H, y)
    selected = featc[batch_idx, length_idx, yw, xw]          # (B, Lc, N, C)

    closs = _contrastive_term(selected, x, y, label_id)

    pred_flat = jnp.ravel(jnp.squeeze(predicts, axis=1)).astype(jnp.float32)
    targ_flat = jnp.ravel(targets).astype(jnp.float32)
    mse = _mse_mean(pred_flat, targ_flat)

    return mse + closs


# ---------------------------------------------------------------------------
# Pure-JAX reference (mirrors the PyTorch module, f32 end-to-end)
# ---------------------------------------------------------------------------
def reference_loss(predicts, feature, pre_coord, targets, label_id):
    B, C, L, H, W = feature.shape
    _, Lc, N, _ = pre_coord.shape
    idx = jnp.arange(B * Lc * N).reshape(B, Lc, N)
    batch_idx = idx // (Lc * N)
    length_idx = idx % Lc
    x = pre_coord[..., 0]
    y = pre_coord[..., 1]
    xw = jnp.where(x < 0, x + W, x)
    yw = jnp.where(y < 0, y + H, y)
    selected = feature[batch_idx, :, length_idx, yw, xw].astype(jnp.float32)

    nrm = jnp.sqrt(jnp.sum(selected * selected, axis=-1, keepdims=True))
    seln = selected / jnp.maximum(nrm, 1e-12)
    pad_all = pre_coord[..., 0] < 0
    coord_f = pre_coord.astype(jnp.float32)

    def term(l, thr):
        if l == 0:
            fa, fb, pa, pb = seln, seln, pad_all, pad_all
            ca, cb, la, lb = coord_f, coord_f, label_id, label_id
        else:
            fa, fb = seln[:, :-l], seln[:, l:]
            pa, pb = pad_all[:, :-l], pad_all[:, l:]
            ca, cb = coord_f[:, :-l], coord_f[:, l:]
            la, lb = label_id[:, :-l], label_id[:, l:]
        sim = jnp.einsum('blnc,blmc->blnm', fa, fb)
        pad = pa[..., :, None] | pb[..., None, :]
        d = jnp.sqrt(jnp.sum((ca[..., :, None, :] - cb[..., None, :, :]) ** 2, axis=-1))
        mask = (d < thr) & ~pad
        match = (la[..., :, None] == lb[..., None, :]).astype(jnp.float32)
        return jnp.sum(jnp.where(mask, (sim - match) ** 2, 0.0)) / jnp.sum(mask)

    closs = (term(0, OVERLAP_RANGE[0]) + term(1, OVERLAP_RANGE[0])
             + term(2, OVERLAP_RANGE[1]) + term(3, OVERLAP_RANGE[2])) / 4.0
    mse = jnp.mean((jnp.squeeze(predicts, axis=1) - targets) ** 2)
    return mse + closs


if __name__ == "__main__":
    B, C, L, N, H, W = 2, 16, 8, 8, 16, 16

    key = jax.random.PRNGKey(0)
    k1, k2, k3, k4, k5 = jax.random.split(key, 5)

    feature = jax.random.normal(k1, (B, C, L, H, W), dtype=jnp.float32)
    predicts = jax.random.normal(k2, (B, 1, L, H, W), dtype=jnp.float32)
    targets = jax.random.normal(k3, (B, L, H, W), dtype=jnp.float32)
    pre_coord = jax.random.randint(k4, (B, L, N, 2), 0, W, dtype=jnp.int32)
    label_id = jax.random.randint(k5, (B, L, N), 0, 4, dtype=jnp.int32)

    # mark a few entries as PAD (coord < 0), matching the module's PAD convention
    pre_coord = pre_coord.at[0, :, N - 1, :].set(-1)
    pre_coord = pre_coord.at[1, 3, 2, :].set(-1)

    out = jax.jit(contrastive_loss)(predicts, feature, pre_coord, targets, label_id)
    out = jax.block_until_ready(out)

    ref = reference_loss(predicts, feature, pre_coord, targets, label_id)
    assert jnp.isfinite(out), "kernel produced non-finite loss"
    # bf16 MXU inputs (f32 accumulate) -> slightly looser tolerance than pure f32
    assert jnp.allclose(out, ref, rtol=2e-3, atol=2e-3), (out, ref)

    print("KERNEL_OK")
</pallas_src>

<mosaic_0001>
module attributes {stable_mosaic.version = 11 : i64} {
  func.func @kernel(%arg0: i32, %arg1: memref<32x128xf32, #tpu.memory_space<vmem>>, %arg2: memref<32x128xf32, #tpu.memory_space<vmem>>, %arg3: memref<1x1xf32, #tpu.memory_space<vmem>>, %arg4: memref<1x1xf32, #tpu.memory_space<vmem>>) attributes {dimension_semantics = [#tpu.dimension_semantics<arbitrary>], iteration_bounds = array<i64: 1>, scalar_prefetch = 0 : i64, scratch_operands = 1 : i64, tpu.core_type = #tpu.core_type<tc>, window_params = [{transform_indices = @transform_0, window_bounds = array<i64: 32, 128>}, {transform_indices = @transform_1, window_bounds = array<i64: 32, 128>}, {pipeline_mode = #tpu.pipeline_mode<synchronous>, transform_indices = @transform_2, window_bounds = array<i64: 1, 1>}]} {
    %c0_i32 = arith.constant 0 : i32
    %0 = arith.cmpi eq, %arg0, %c0_i32 : i32
    %1 = arith.extui %0 : i1 to i32
    %c0_i32_0 = arith.constant 0 : i32
    %2 = arith.cmpi ne, %1, %c0_i32_0 : i32
    scf.if %2 {
      %cst_10 = arith.constant 0.000000e+00 : f32
      %18 = vector.broadcast %cst_10 : f32 to vector<1x1xf32>
      %c0_11 = arith.constant 0 : index
      %c0_12 = arith.constant 0 : index
      %19 = vector.load %arg4[%c0_11, %c0_12] : memref<1x1xf32, #tpu.memory_space<vmem>>, vector<1x1xf32>
      tpu.vector_store %arg4[%c0_11, %c0_12], %18 {strides = array<i32>} : memref<1x1xf32, #tpu.memory_space<vmem>>, vector<1x1xf32>,
    } else {
    }
    %c0 = arith.constant 0 : index
    %c0_1 = arith.constant 0 : index
    %3 = vector.load %arg1[%c0, %c0_1] : memref<32x128xf32, #tpu.memory_space<vmem>>, vector<32x128xf32>
    %c0_2 = arith.constant 0 : index
    %c0_3 = arith.constant 0 : index
    %4 = vector.load %arg2[%c0_2, %c0_3] : memref<32x128xf32, #tpu.memory_space<vmem>>, vector<32x128xf32>
    %5 = arith.subf %3, %4 : vector<32x128xf32>
    %c0_4 = arith.constant 0 : index
    %c0_5 = arith.constant 0 : index
    %6 = vector.load %arg4[%c0_4, %c0_5] : memref<1x1xf32, #tpu.memory_space<vmem>>, vector<1x1xf32>
    %7 = arith.mulf %5, %5 : vector<32x128xf32>
    %8 = vector.shape_cast %7 : vector<32x128xf32> to vector<1x32x128xf32>
    %cst = arith.constant dense<0.000000e+00> : vector<1xf32>
    %9 = vector.multi_reduction <add>, %8, %cst [1, 2] : vector<1x32x128xf32> to vector<1xf32>
    %10 = vector.shape_cast %9 : vector<1xf32> to vector<1x1x1xf32>
    %11 = vector.extract %10[0, 0, 0] : f32 from vector<1x1x1xf32>
    %12 = vector.broadcast %11 : f32 to vector<1x1xf32>
    %13 = arith.addf %6, %12 : vector<1x1xf32>
    %c0_6 = arith.constant 0 : index
    %c0_7 = arith.constant 0 : index
    %14 = vector.load %arg4[%c0_6, %c0_7] : memref<1x1xf32, #tpu.memory_space<vmem>>, vector<1x1xf32>
    tpu.vector_store %arg4[%c0_6, %c0_7], %13 {strides = array<i32>} : memref<1x1xf32, #tpu.memory_space<vmem>>, vector<1x1xf32>,
    %c0_i32_8 = arith.constant 0 : i32
    %15 = arith.cmpi eq, %arg0, %c0_i32_8 : i32
    %16 = arith.extui %15 : i1 to i32
    %c0_i32_9 = arith.constant 0 : i32
    %17 = arith.cmpi ne, %16, %c0_i32_9 : i32
    scf.if %17 {
      %c0_10 = arith.constant 0 : index
      %c0_11 = arith.constant 0 : index
      %18 = vector.load %arg4[%c0_10, %c0_11] : memref<1x1xf32, #tpu.memory_space<vmem>>, vector<1x1xf32>
      %cst_12 = arith.constant 2.44140625E-4 : f32
      %19 = vector.broadcast %cst_12 : f32 to vector<1x1xf32>
      %20 = arith.mulf %18, %19 : vector<1x1xf32>
      %c0_13 = arith.constant 0 : index
      %c0_14 = arith.constant 0 : index
      %21 = vector.load %arg3[%c0_13, %c0_14] : memref<1x1xf32, #tpu.memory_space<vmem>>, vector<1x1xf32>
      tpu.vector_store %arg3[%c0_13, %c0_14], %20 {strides = array<i32>} : memref<1x1xf32, #tpu.memory_space<vmem>>, vector<1x1xf32>,
    } else {
    }
    return
  }
  func.func @transform_0(%arg0: i32) -> (i32, i32) {
    %c0_i32 = arith.constant 0 : i32
    %c0_i32_0 = arith.constant 0 : i32
    return %arg0, %c0_i32 : i32, i32
  }
  func.func @transform_1(%arg0: i32) -> (i32, i32) {
    %c0_i32 = arith.constant 0 : i32
    %c0_i32_0 = arith.constant 0 : i32
    return %arg0, %c0_i32 : i32, i32
  }
  func.func @transform_2(%arg0: i32) -> (i32, i32) {
    %c0_i32 = arith.constant 0 : i32
    %c0_i32_0 = arith.constant 0 : i32
    %c0_i32_1 = arith.constant 0 : i32
    return %c0_i32, %c0_i32_0 : i32, i32
  }
}

module attributes {stable_mosaic.version = 11 : i64} {
  func.func @kernel(%arg0: i32, %arg1: memref<1x128x128xbf16, #tpu.memory_space<vmem>>, %arg2: memref<1x8x128xf32, #tpu.memory_space<vmem>>, %arg3: memref<1x8x128xf32, #tpu.memory_space<vmem>>) attributes {dimension_semantics = [#tpu.dimension_semantics<parallel>], iteration_bounds = array<i64: 2>, scalar_prefetch = 0 : i64, scratch_operands = 0 : i64, tpu.core_type = #tpu.core_type<tc>, window_params = [{transform_indices = @transform_0, window_bounds = array<i64: 1, 128, 128>}, {transform_indices = @transform_1, window_bounds = array<i64: 1, 8, 128>}, {transform_indices = @transform_2, window_bounds = array<i64: 1, 8, 128>}]} {
    %c0 = arith.constant 0 : index
    %c0_0 = arith.constant 0 : index
    %c0_1 = arith.constant 0 : index
    %0 = vector.load %arg1[%c0, %c0_0, %c0_1] : memref<1x128x128xbf16, #tpu.memory_space<vmem>>, vector<1x128x128xbf16>
    %1 = vector.shape_cast %0 : vector<1x128x128xbf16> to vector<128x128xbf16>
    %c0_2 = arith.constant 0 : index
    %c0_3 = arith.constant 0 : index
    %c0_4 = arith.constant 0 : index
    %2 = vector.load %arg2[%c0_2, %c0_3, %c0_4] : memref<1x8x128xf32, #tpu.memory_space<vmem>>, vector<1x8x128xf32>
    %3 = vector.shape_cast %2 : vector<1x8x128xf32> to vector<8x128xf32>
    %4 = arith.extf %1 : vector<128x128xbf16> to vector<128x128xf32>
    %5 = arith.mulf %4, %4 : vector<128x128xf32>
    %cst = arith.constant dense<0.000000e+00> : vector<128xf32>
    %6 = vector.multi_reduction <add>, %5, %cst [1] : vector<128x128xf32> to vector<128xf32>
    %7 = vector.shape_cast %6 : vector<128xf32> to vector<128x1xf32>
    %cst_5 = arith.constant 1.000000e-24 : f32
    %8 = vector.broadcast %cst_5 : f32 to vector<128x1xf32>
    %9 = arith.maximumf %7, %8 : vector<128x1xf32>
    %10 = math.rsqrt %9 : vector<128x1xf32>
    %11 = vector.broadcast %10 : vector<128x1xf32> to vector<128x128xf32>
    %12 = arith.mulf %4, %11 : vector<128x128xf32>
    %13 = arith.truncf %12 : vector<128x128xf32> to vector<128x128xbf16>
    %cst_6 = arith.constant dense<0.000000e+00> : vector<128x128xf32>
    %14 = tpu.matmul %13, %13, %cst_6 {dimension_numbers = #tpu.dot_dimension_numbers<[1], [1], [0], [0], [0, 0, 1, 0], [], []>} : vector<128x128xbf16>, vector<128x128xbf16>, vector<128x128xf32> -> vector<128x128xf32>
    %15 = tpu.transpose %3, [1, 0] : vector<8x128xf32> -> vector<128x8xf32>
    %16 = vector.extract_strided_slice %3 {offsets = [0, 0], sizes = [1, 128], strides = [1, 1]} : vector<8x128xf32> to vector<1x128xf32>
    %17 = vector.extract_strided_slice %3 {offsets = [1, 0], sizes = [1, 128], strides = [1, 1]} : vector<8x128xf32> to vector<1x128xf32>
    %18 = vector.extract_strided_slice %3 {offsets = [2, 0], sizes = [1, 128], strides = [1, 1]} : vector<8x128xf32> to vector<1x128xf32>
    %19 = vector.extract_strided_slice %3 {offsets = [3, 0], sizes = [1, 128], strides = [1, 1]} : vector<8x128xf32> to vector<1x128xf32>
    %20 = vector.extract_strided_slice %15 {offsets = [0, 0], sizes = [128, 1], strides = [1, 1]} : vector<128x8xf32> to vector<128x1xf32>
    %21 = vector.extract_strided_slice %15 {offsets = [0, 1], sizes = [128, 1], strides = [1, 1]} : vector<128x8xf32> to vector<128x1xf32>
    %22 = vector.extract_strided_slice %15 {offsets = [0, 2], sizes = [128, 1], strides = [1, 1]} : vector<128x8xf32> to vector<128x1xf32>
    %23 = vector.extract_strided_slice %15 {offsets = [0, 3], sizes = [128, 1], strides = [1, 1]} : vector<128x8xf32> to vector<128x1xf32>
    %24 = vector.broadcast %20 : vector<128x1xf32> to vector<128x128xf32>
    %25 = vector.broadcast %16 : vector<1x128xf32> to vector<128x128xf32>
    %26 = arith.subf %24, %25 : vector<128x128xf32>
    %27 = vector.broadcast %21 : vector<128x1xf32> to vector<128x128xf32>
    %28 = vector.broadcast %17 : vector<1x128xf32> to vector<128x128xf32>
    %29 = arith.subf %27, %28 : vector<128x128xf32>
    %30 = arith.mulf %26, %26 : vector<128x128xf32>
    %31 = arith.mulf %29, %29 : vector<128x128xf32>
    %32 = arith.addf %30, %31 : vector<128x128xf32>
    %cst_7 = arith.constant 0.000000e+00 : f32
    %33 = vector.broadcast %cst_7 : f32 to vector<128x1xf32>
    %34 = arith.cmpf olt, %20, %33 : vector<128x1xf32>
    %cst_8 = arith.constant 0.000000e+00 : f32
    %35 = vector.broadcast %cst_8 : f32 to vector<1x128xf32>
    %36 = arith.cmpf olt, %16, %35 : vector<1x128xf32>
    %37 = vector.broadcast %34 : vector<128x1xi1> to vector<128x128xi1>
    %38 = vector.broadcast %36 : vector<1x128xi1> to vector<128x128xi1>
    %39 = arith.ori %37, %38 : vector<128x128xi1>
    %cst_9 = arith.constant dense<true> : vector<128x128xi1>
    %40 = arith.xori %39, %cst_9 : vector<128x128xi1>
    %41 = vector.broadcast %22 : vector<128x1xf32> to vector<128x128xf32>
    %42 = vector.broadcast %18 : vector<1x128xf32> to vector<128x128xf32>
    %43 = arith.cmpf oeq, %41, %42 : vector<128x128xf32>
    %cst_10 = arith.constant 1.000000e+00 : f32
    %cst_11 = arith.constant 0.000000e+00 : f32
    %44 = vector.broadcast %cst_10 : f32 to vector<128x128xf32>
    %45 = vector.broadcast %cst_11 : f32 to vector<128x128xf32>
    %46 = arith.select %43, %44, %45 : vector<128x128xi1>, vector<128x128xf32>
    %47 = arith.subf %14, %46 : vector<128x128xf32>
    %48 = arith.mulf %47, %47 : vector<128x128xf32>
    %49 = vector.broadcast %19 : vector<1x128xf32> to vector<128x128xf32>
    %50 = vector.broadcast %23 : vector<128x1xf32> to vector<128x128xf32>
    %51 = arith.subf %49, %50 : vector<128x128xf32>
    %cst_12 = arith.constant 0.000000e+00 : f32
    %52 = vector.broadcast %cst_12 : f32 to vector<128x128xf32>
    %53 = arith.cmpf oeq, %51, %52 : vector<128x128xf32>
    %cst_13 = arith.constant 6.250000e+02 : f32
    %54 = vector.broadcast %cst_13 : f32 to vector<128x128xf32>
    %55 = arith.cmpf olt, %32, %54 : vector<128x128xf32>
    %56 = arith.andi %55, %40 : vector<128x128xi1>
    %57 = arith.andi %53, %56 : vector<128x128xi1>
    %cst_14 = arith.constant 0.000000e+00 : f32
    %58 = vector.broadcast %cst_14 : f32 to vector<128x128xf32>
    %59 = arith.select %57, %48, %58 : vector<128x128xi1>, vector<128x128xf32>
    %cst_15 = arith.constant dense<0.000000e+00> : vector<128xf32>
    %60 = vector.multi_reduction <add>, %59, %cst_15 [0] : vector<128x128xf32> to vector<128xf32>
    %61 = vector.shape_cast %60 : vector<128xf32> to vector<1x128xf32>
    %cst_16 = arith.constant 1.000000e+00 : f32
    %cst_17 = arith.constant 0.000000e+00 : f32
    %62 = vector.broadcast %cst_16 : f32 to vector<128x128xf32>
    %63 = vector.broadcast %cst_17 : f32 to vector<128x128xf32>
    %64 = arith.select %57, %62, %63 : vector<128x128xi1>, vector<128x128xf32>
    %cst_18 = arith.constant dense<0.000000e+00> : vector<128xf32>
    %65 = vector.multi_reduction <add>, %64, %cst_18 [0] : vector<128x128xf32> to vector<128xf32>
    %66 = vector.shape_cast %65 : vector<128xf32> to vector<1x128xf32>
    %cst_19 = arith.constant 1.000000e+00 : f32
    %67 = vector.broadcast %cst_19 : f32 to vector<128x128xf32>
    %68 = arith.cmpf oeq, %51, %67 : vector<128x128xf32>
    %cst_20 = arith.constant 6.250000e+02 : f32
    %69 = vector.broadcast %cst_20 : f32 to vector<128x128xf32>
    %70 = arith.cmpf olt, %32, %69 : vector<128x128xf32>
    %71 = arith.andi %70, %40 : vector<128x128xi1>
    %72 = arith.andi %68, %71 : vector<128x128xi1>
    %cst_21 = arith.constant 0.000000e+00 : f32
    %73 = vector.broadcast %cst_21 : f32 to vector<128x128xf32>
    %74 = arith.select %72, %48, %73 : vector<128x128xi1>, vector<128x128xf32>
    %cst_22 = arith.constant dense<0.000000e+00> : vector<128xf32>
    %75 = vector.multi_reduction <add>, %74, %cst_22 [0] : vector<128x128xf32> to vector<128xf32>
    %76 = vector.shape_cast %75 : vector<128xf32> to vector<1x128xf32>
    %cst_23 = arith.constant 1.000000e+00 : f32
    %cst_24 = arith.constant 0.000000e+00 : f32
    %77 = vector.broadcast %cst_23 : f32 to vector<128x128xf32>
    %78 = vector.broadcast %cst_24 : f32 to vector<128x128xf32>
    %79 = arith.select %72, %77, %78 : vector<128x128xi1>, vector<128x128xf32>
    %cst_25 = arith.constant dense<0.000000e+00> : vector<128xf32>
    %80 = vector.multi_reduction <add>, %79, %cst_25 [0] : vector<128x128xf32> to vector<128xf32>
    %81 = vector.shape_cast %80 : vector<128xf32> to vector<1x128xf32>
    %cst_26 = arith.constant 2.000000e+00 : f32
    %82 = vector.broadcast %cst_26 : f32 to vector<128x128xf32>
    %83 = arith.cmpf oeq, %51, %82 : vector<128x128xf32>
    %cst_27 = arith.constant 9.000000e+02 : f32
    %84 = vector.broadcast %cst_27 : f32 to vector<128x128xf32>
    %85 = arith.cmpf olt, %32, %84 : vector<128x128xf32>
    %86 = arith.andi %85, %40 : vector<128x128xi1>
    %87 = arith.andi %83, %86 : vector<128x128xi1>
    %cst_28 = arith.constant 0.000000e+00 : f32
    %88 = vector.broadcast %cst_28 : f32 to vector<128x128xf32>
    %89 = arith.select %87, %48, %88 : vector<128x128xi1>, vector<128x128xf32>
    %cst_29 = arith.constant dense<0.000000e+00> : vector<128xf32>
    %90 = vector.multi_reduction <add>, %89, %cst_29 [0] : vector<128x128xf32> to vector<128xf32>
    %91 = vector.shape_cast %90 : vector<128xf32> to vector<1x128xf32>
    %cst_30 = arith.constant 1.000000e+00 : f32
    %cst_31 = arith.constant 0.000000e+00 : f32
    %92 = vector.broadcast %cst_30 : f32 to vector<128x128xf32>
    %93 = vector.broadcast %cst_31 : f32 to vector<128x128xf32>
    %94 = arith.select %87, %92, %93 : vector<128x128xi1>, vector<128x128xf32>
    %cst_32 = arith.constant dense<0.000000e+00> : vector<128xf32>
    %95 = vector.multi_reduction <add>, %94, %cst_32 [0] : vector<128x128xf32> to vector<128xf32>
    %96 = vector.shape_cast %95 : vector<128xf32> to vector<1x128xf32>
    %cst_33 = arith.constant 3.000000e+00 : f32
    %97 = vector.broadcast %cst_33 : f32 to vector<128x128xf32>
    %98 = arith.cmpf oeq, %51, %97 : vector<128x128xf32>
    %cst_34 = arith.constant 1.225000e+03 : f32
    %99 = vector.broadcast %cst_34 : f32 to vector<128x128xf32>
    %100 = arith.cmpf olt, %32, %99 : vector<128x128xf32>
    %101 = arith.andi %100, %40 : vector<128x128xi1>
    %102 = arith.andi %98, %101 : vector<128x128xi1>
    %cst_35 = arith.constant 0.000000e+00 : f32
    %103 = vector.broadcast %cst_35 : f32 to vector<128x128xf32>
    %104 = arith.select %102, %48, %103 : vector<128x128xi1>, vector<128x128xf32>
    %cst_36 = arith.constant dense<0.000000e+00> : vector<128xf32>
    %105 = vector.multi_reduction <add>, %104, %cst_36 [0] : vector<128x128xf32> to vector<128xf32>
    %106 = vector.shape_cast %105 : vector<128xf32> to vector<1x128xf32>
    %cst_37 = arith.constant 1.000000e+00 : f32
    %cst_38 = arith.constant 0.000000e+00 : f32
    %107 = vector.broadcast %cst_37 : f32 to vector<128x128xf32>
    %108 = vector.broadcast %cst_38 : f32 to vector<128x128xf32>
    %109 = arith.select %102, %107, %108 : vector<128x128xi1>, vector<128x128xf32>
    %cst_39 = arith.constant dense<0.000000e+00> : vector<128xf32>
    %110 = vector.multi_reduction <add>, %109, %cst_39 [0] : vector<128x128xf32> to vector<128xf32>
    %111 = vector.shape_cast %110 : vector<128xf32> to vector<1x128xf32>
    %112 = tpu.concatenate %61, %76, %91, %106, %66, %81, %96, %111 in 0 : vector<1x128xf32>, vector<1x128xf32>, vector<1x128xf32>, vector<1x128xf32>, vector<1x128xf32>, vector<1x128xf32>, vector<1x128xf32>, vector<1x128xf32> -> vector<8x128xf32>
    %113 = vector.shape_cast %112 : vector<8x128xf32> to vector<1x8x128xf32>
    %c0_40 = arith.constant 0 : index
    %c0_41 = arith.constant 0 : index
    %c0_42 = arith.constant 0 : index
    %114 = vector.load %arg3[%c0_40, %c0_41, %c0_42] : memref<1x8x128xf32, #tpu.memory_space<vmem>>, vector<1x8x128xf32>
    tpu.vector_store %arg3[%c0_40, %c0_41, %c0_42], %113 {strides = array<i32>} : memref<1x8x128xf32, #tpu.memory_space<vmem>>, vector<1x8x128xf32>,
    return
  }
  func.func @transform_0(%arg0: i32) -> (i32, i32, i32) {
    %c0_i32 = arith.constant 0 : i32
    %c0_i32_0 = arith.constant 0 : i32
    %c0_i32_1 = arith.constant 0 : i32
    return %arg0, %c0_i32, %c0_i32_0 : i32, i32, i32
  }
  func.func @transform_1(%arg0: i32) -> (i32, i32, i32) {
    %c0_i32 = arith.constant 0 : i32
    %c0_i32_0 = arith.constant 0 : i32
    %c0_i32_1 = arith.constant 0 : i32
    return %arg0, %c0_i32, %c0_i32_0 : i32, i32, i32
  }
  func.func @transform_2(%arg0: i32) -> (i32, i32, i32) {
    %c0_i32 = arith.constant 0 : i32
    %c0_i32_0 = arith.constant 0 : i32
    %c0_i32_1 = arith.constant 0 : i32
    return %arg0, %c0_i32, %c0_i32_0 : i32, i32, i32
  }
}

</mosaic_0001>

<bundles_post_ra>
// kernel: contrastive_loss.3
= control target key start
LH: loop header
LB: loop body
LE: loop exit
PB: predicated region body
PF: predicated region fallthrough
CT: control target
= control target key end

     0   :  { %s150_s0 = inlined_call_operand.vmem [shape: f32[32,128], index: 0, kind: input, shape index: {}]   ;;  %s151_s1 = inlined_call_operand.vmem [shape: f32[32,128], index: 1, kind: input, shape index: {}]   ;;  %s152_s2 = inlined_call_operand.hbm [shape: f32[1,1], index: 2, kind: output, shape index: {}]  }
   0x1   :  { %v18_v0 = vld [vmem:[%s150_s0] sm:$0xff]  ;;  %v19_v1 = vld [vmem:[%s150_s0 + $0x8] sm:$0xff]  ;;  %v20_v2 = vld [vmem:[%s150_s0 + $0x10] sm:$0xff] }
   0x2   :  { %v21_v3 = vld [vmem:[%s150_s0 + $0x18] sm:$0xff]  ;;  %v22_v4 = vld [vmem:[%s151_s1] sm:$0xff]  ;;  %v23_v5 = vld [vmem:[%s151_s1 + $0x8] sm:$0xff] }
   0x3   :  { %v24_v6 = vld [vmem:[%s151_s1 + $0x10] sm:$0xff]  ;;  %v25_v7 = vld [vmem:[%s151_s1 + $0x18] sm:$0xff]  ;;  %v26_v8 = vsub.f32 %v18_v0, %v22_v4  ;;  %v27_v9 = vsub.f32 %v19_v1, %v23_v5 }
   0x4   :  { %7 = vsyncpa [#allocation4], 0  ;;  %v28_v10 = vsub.f32 %v20_v2, %v24_v6  ;;  %v29_v11 = vsub.f32 %v21_v3, %v25_v7  ;;  %vm16_vm0 = vcmask 0   ;;  %v103_v19 = vmov 0.0   ;;  %s104_s1 = smov [#allocation3]   ;;  %s64_s28 = sshll.u32 %s152_s2, 4  ;;  %s65_s28 = int_to_ptr.hbm [resolvable:$true] %s64_s28 }
   0x5   :  { %v31_v12 = vmul.f32 %v26_v8, %v26_v8  ;;  %v32_v13 = vmul.f32 %v27_v9, %v27_v9  ;;  %17 = vst.msk [vmem:[#allocation2] sm:$0x1] %vm16_vm0, %v103_v19  ;;  %s62_s25 = sshll.u32 %s104_s1, 4  ;;  %s63_s25 = int_to_ptr.vmem [resolvable:$true] %s62_s25 }
   0x6   :  { %v33_v14 = vmul.f32 %v28_v10, %v28_v10  ;;  %v34_v15 = vmul.f32 %v29_v11, %v29_v11 }
   0x7   :  { %v35_v16 = vadd.f32 %v32_v13, %v31_v12 }
   0x9   :  { %v36_v17 = vadd.f32 %v35_v16, %v33_v14 }
   0xb   :  { %v37_v18 = vadd.f32 %v36_v17, %v34_v15 }
   0xc   :  { %v30_v27 = vld [vmem:[#allocation2] sm:$0x1] }
   0xd   :  { %38 = vadd.xlane.f32.xlu0 %v37_v18 }
  0x80   :  { %v39_v20 = vpop.xlane.xlu0 %38 }
  0x81   :  { %v40_v21 = vrot.slane %v39_v20, 4 }
  0x83   :  { %v41_v22 = vadd.f32 %v40_v21, %v39_v20 }
  0x85   :  { %v42_v23 = vrot.slane %v41_v22, 2 }
  0x87   :  { %v43_v24 = vadd.f32 %v42_v23, %v41_v22 }
  0x89   :  { %v44_v25 = vrot.slane %v43_v24, 1 }
  0x8b   :  { %v45_v26 = vadd.f32 %v44_v25, %v43_v24 }
  0x8d   :  { %73 = vpush %v45_v26 }
  0xbe   :  { %s74_s0 = spop %73 }
  0xbf   :  { %v47_v28 = vstv %s74_s0 }
  0xc0   :  { %v48_v29 = vadd.f32 %v47_v28, %v30_v27 }
  0xc2   :  { %50 = vst.msk [vmem:[#allocation2] sm:$0x1] %vm16_vm0, %v48_v29 }
  0xc9   :  { %v54_v30 = vld [vmem:[#allocation2] sm:$0x1] }
  0xca   :  { %v55_v31 = vmul.f32 0.00024414063, %v54_v30 }
  0xcc   :  { %56 = vst.msk [vmem:[#allocation3] sm:$0x1] %vm16_vm0, %v55_v31 }
  0xcd   :  { %67 = dma.vmem_to_hbm [thread:$0]  %s63_s25, 16, %s65_s28, [#allocation4]  }
  0xce   :  { %101 = dma.done.wait [#allocation4], 16  }
  0xcf   :  { %102 = vsyncadd [#allocation4], 4294967280 }
  0xd0   :  { %72 = vsyncpa [#allocation4], 1 }

// kernel: contrastive_loss.2
= control target key start
LH: loop header
LB: loop body
LE: loop exit
PB: predicated region body
PF: predicated region fallthrough
CT: control target
= control target key end

     0   :  { %s1859_s9 = smov 0   ;;  %s3844_s0 = inlined_call_operand.vmem [shape: bf16[2,128,128], index: 0, kind: input, shape index: {}]   ;;  %s3845_s1 = inlined_call_operand.vmem [shape: f32[2,8,128], index: 1, kind: input, shape index: {}]   ;;  %s3846_s2 = inlined_call_operand.vmem [shape: f32[2,8,128], index: 2, kind: output, shape index: {}]  }
   0x1 LB: > { %s1689_s10 = sadd.s32 4294967295, %s1836_s9   ;;  %p1693_p0 = scmp.ge.s32.totalorder %s1836_s9, 1  ;;  %s1836_s9 = sphi %s1859_s9, %s12_s9  }
   0x2   : > { %p121_p1 = scmp.lt.s32.totalorder %s1836_s9, 3 }
   0x4   : > { %p122_p2 = pnand %p1693_p0, %p121_p1 }
   0x6   : > { %125 = sbr.rel (%p122_p2) target bundleno = 770 (0x302), region = 28 }
   0xb   : > { %p146_p3 = scmp.lt.s32.totalorder %s1689_s10, 1 }
   0xd   : > { %s4363_s10 = smov (!%p146_p3, %s1689_s10), 1 }
   0xe   : > { %s1700_s11 = sshll.u32 %s4363_s10, 6  ;;  %s1696_s15 = sshll.u32 %s4363_s10, 3 }
   0xf   : > { %s1873_s14 = scalar_lea.vmem %s3844_s0, %s1700_s11  ;;  %s1953_s18 = scalar_lea.vmem %s3845_s1, %s1696_s15 }
  0x10   : > { %v1734_v0 = vld [vmem:[%s1873_s14 + $0x10] sm:$0xff]   ;;  %v1733_v1 = vld [vmem:[%s1873_s14 + $0x8] sm:$0xff]   ;;  %v1702_v2 = vld [vmem:[%s1873_s14] sm:$0xff]   ;;  %s158_s21 = scalar_lea.vmem %s3846_s2, %s1696_s15 }
  0x11   : > { %v1878_v3 = vunpack.c.l.bf16 %v1734_v0  ;;  %v1880_v4 = vunpack.c.l.bf16 %v1733_v1  ;;  %v1882_v5 = vunpack.c.l.bf16 %v1702_v2  ;;  %v1890_v9 = vunpack.c.h.bf16 %v1734_v0  ;;  %v1736_v15 = vld [vmem:[%s1873_s14 + $0x20] sm:$0xff]   ;;  %v1735_v16 = vld [vmem:[%s1873_s14 + $0x18] sm:$0xff]   ;;  %v1737_v23 = vld [vmem:[%s1873_s14 + $0x28] sm:$0xff]  }
  0x12   : > { %v1892_v10 = vunpack.c.h.bf16 %v1733_v1  ;;  %v1894_v11 = vunpack.c.h.bf16 %v1702_v2  ;;  %v1904_v17 = vunpack.c.l.bf16 %v1736_v15  ;;  %v1906_v18 = vunpack.c.h.bf16 %v1735_v16  ;;  %v1738_v30 = vld [vmem:[%s1873_s14 + $0x30] sm:$0xff]   ;;  %v1739_v31 = vld [vmem:[%s1873_s14 + $0x38] sm:$0xff]   ;;  %v1956_v40 = vld [vmem:[%s1953_s18] sm:$0xff] }
  0x13   : > { %v196_v6 = vmul.f32 %v1878_v3, %v1878_v3  ;;  %v194_v7 = vmul.f32 %v1880_v4, %v1880_v4  ;;  %v192_v8 = vmul.f32 %v1882_v5, %v1882_v5  ;;  %v197_v12 = vmul.f32 %v1890_v9, %v1890_v9 }
  0x14   : > { %v195_v13 = vmul.f32 %v1892_v10, %v1892_v10  ;;  %v193_v14 = vmul.f32 %v1894_v11, %v1894_v11  ;;  %v1908_v19 = vunpack.c.l.bf16 %v1735_v16  ;;  %v200_v20 = vmul.f32 %v1904_v17, %v1904_v17 }
  0x15   : > { %216 = vadd.xlane.f32.xlu2 %v196_v6  ;;  %212 = vadd.xlane.f32.xlu1 %v194_v7  ;;  %v199_v21 = vmul.f32 %v1906_v18, %v1906_v18  ;;  %v1917_v24 = vunpack.c.h.bf16 %v1737_v23  ;;  %v1919_v25 = vunpack.c.l.bf16 %v1737_v23  ;;  %v1921_v26 = vunpack.c.h.bf16 %v1736_v15 }
  0x16   : > { %208 = vadd.xlane.f32.xlu0 %v192_v8  ;;  %v198_v22 = vmul.f32 %v1908_v19, %v1908_v19  ;;  %v1931_v32 = vunpack.c.h.bf16 %v1738_v30  ;;  %v1933_v33 = vunpack.c.l.bf16 %v1739_v31  ;;  %v1935_v34 = vunpack.c.l.bf16 %v1738_v30 }
  0x17   : > { %v203_v27 = vmul.f32 %v1917_v24, %v1917_v24  ;;  %v202_v28 = vmul.f32 %v1919_v25, %v1919_v25  ;;  %v201_v29 = vmul.f32 %v1921_v26, %v1921_v26  ;;  %v1943_v38 = vunpack.c.h.bf16 %v1739_v31 }
  0x18   : > { %v205_v35 = vmul.f32 %v1931_v32, %v1931_v32  ;;  %v206_v36 = vmul.f32 %v1933_v33, %v1933_v33  ;;  %v204_v37 = vmul.f32 %v1935_v34, %v1935_v34 }
  0x19   : > { %v207_v39 = vmul.f32 %v1943_v38, %v1943_v38 }
  0x1d   : > { %218 = vadd.xlane.f32.xlu2 %v197_v12  ;;  %214 = vadd.xlane.f32.xlu1 %v195_v13 }
  0x1e   : > { %210 = vadd.xlane.f32.xlu0 %v193_v14 }
  0x25   : > { %224 = vadd.xlane.f32.xlu2 %v200_v20  ;;  %222 = vadd.xlane.f32.xlu1 %v199_v21 }
  0x26   : > { %220 = vadd.xlane.f32.xlu0 %v198_v22 }
  0x2d   : > { %230 = vadd.xlane.f32.xlu2 %v203_v27  ;;  %228 = vadd.xlane.f32.xlu1 %v202_v28 }
  0x2e   : > { %226 = vadd.xlane.f32.xlu0 %v201_v29 }
  0x35   : > { %234 = vadd.xlane.f32.xlu1 %v205_v35  ;;  %236 = vadd.xlane.f32.xlu2 %v206_v36 }
  0x36   : > { %232 = vadd.xlane.f32.xlu0 %v204_v37 }
  0x3e   : > { %238 = vadd.xlane.f32.xlu0 %v207_v39 }
  0x6f   : > { %489 = vxpose.xlu1.b32.start.end [1/1] (short) %v1956_v40, 128 }
  0x88   : > { %v217_v41 = vpop.xlane.xlu2 %216  ;;  %v213_v42 = vpop.xlane.xlu1 %212 }
  0x89   : > { %v244_v43 = vmax.f32 %v217_v41, 1e-24  ;;  %v1959_v44 = vmax.f32 %v213_v42, 1e-24  ;;  %v209_v45 = vpop.xlane.xlu0 %208 }
  0x8a   : > { %v240_v46 = vmax.f32 %v209_v45, 1e-24 }
  0x8b   : > { %1797 = vrsqrt.f32 %v244_v43  ;;  %vm302_vm0 = vweird.f32 %v244_v43  ;;  %vm282_vm11 = vweird.f32 %v1959_v44 }
  0x8c   : > { %1799 = vrsqrt.f32 %v1959_v44  ;;  %vm262_vm2 = vweird.f32 %v240_v46 }
  0x8d   : > { %1801 = vrsqrt.f32 %v240_v46 }
  0x90   : > { %v219_v47 = vpop.xlane.xlu2 %218  ;;  %v215_v48 = vpop.xlane.xlu1 %214 }
  0x91   : > { %v1962_v49 = vpop.eup %1797  ;;  %v245_v50 = vmax.f32 %v219_v47, 1e-24  ;;  %v1964_v51 = vmax.f32 %v215_v48, 1e-24  ;;  %v211_v52 = vpop.xlane.xlu0 %210 }
  0x92   : > { %v1966_v53 = vpop.eup %1799  ;;  %v297_v54 = vmul.f32 %v1962_v49, %v244_v43  ;;  %v241_v55 = vmax.f32 %v211_v52, 1e-24  ;;  %vm303_vm1 = vweird.f32 %v1962_v49 }
  0x93   : > { %v1969_v56 = vpop.eup %1801  ;;  %v277_v57 = vmul.f32 %v1966_v53, %v1959_v44  ;;  %1803 = vrsqrt.f32 %v245_v50  ;;  %vm1988_vm4 = vmor %vm302_vm0, %vm303_vm1  ;;  %vm312_vm5 = vweird.f32 %v245_v50  ;;  %vm283_vm7 = vweird.f32 %v1966_v53 }
  0x94   : > { %v298_v58 = vmul.f32 %v1962_v49, %v297_v54  ;;  %v257_v59 = vmul.f32 %v1969_v56, %v240_v46  ;;  %1805 = vrsqrt.f32 %v1964_v51  ;;  %vm263_vm3 = vweird.f32 %v1969_v56  ;;  %vm2009_vm14 = vmor %vm282_vm11, %vm283_vm7 }
  0x95   : > { %v278_v60 = vmul.f32 %v1966_v53, %v277_v57  ;;  %1807 = vrsqrt.f32 %v241_v55  ;;  %vm1996_vm8 = vmor %vm262_vm2, %vm263_vm3  ;;  %vm272_vm9 = vweird.f32 %v241_v55  ;;  %vm292_vm15 = vweird.f32 %v1964_v51 }
  0x96   : > { %v299_v61 = vmul.f32 0.5, %v298_v58  ;;  %v258_v62 = vmul.f32 %v1969_v56, %v257_v59 }
  0x97   : > { %v279_v63 = vmul.f32 0.5, %v278_v60 }
  0x98   : > { %v300_v0 = vsub.f32 1.5, %v299_v61  ;;  %v259_v1 = vmul.f32 0.5, %v258_v62  ;;  %v1978_v2 = vpop.xlane.xlu1 %222  ;;  %v1980_v7 = vpop.xlane.xlu2 %224 }
  0x99   : > { %v1804_v6 = vpop.eup %1803  ;;  %v1982_v8 = vpop.xlane.xlu0 %220  ;;  %v280_v16 = vsub.f32 1.5, %v279_v63 }
  0x9a   : > { %v1806_v12 = vpop.eup %1805  ;;  %v260_v13 = vsub.f32 1.5, %v259_v1  ;;  %v307_v14 = vmul.f32 %v1804_v6, %v245_v50  ;;  %v301_v21 = vmul.f32 %v1962_v49, %v300_v0  ;;  %vm313_vm6 = vweird.f32 %v1804_v6 }
  0x9b   : > { %v1808_v15 = vpop.eup %1807  ;;  %v287_v20 = vmul.f32 %v1806_v12, %v1964_v51  ;;  %v281_v35 = vmul.f32 %v1966_v53, %v280_v16  ;;  %vm2005_vm12 = vmor %vm312_vm5, %vm313_vm6  ;;  %vm293_vm13 = vweird.f32 %v1806_v12 }
  0x9c   : > { %v308_v22 = vmul.f32 %v1804_v6, %v307_v14  ;;  %v267_v23 = vmul.f32 %v1808_v15, %v241_v55  ;;  %v261_v29 = vmul.f32 %v1969_v56, %v260_v13  ;;  %v305_v39 = vsel %vm1988_vm4, %v1962_v49, %v301_v21  ;;  %vm294_vm1 = vmor %vm292_vm15, %vm293_vm13 }
  0x9d   : > { %v288_v28 = vmul.f32 %v1806_v12, %v287_v20  ;;  %vm273_vm10 = vweird.f32 %v1808_v15  ;;  %v420_v44 = vmul.f32 %v1878_v3, %v305_v39  ;;  %v285_v50 = vsel %vm2009_vm14, %v1966_v53, %v281_v35 }
  0x9e   : > { %v309_v30 = vmul.f32 0.5, %v308_v22  ;;  %v268_v31 = vmul.f32 %v1808_v15, %v267_v23  ;;  %v265_v49 = vsel %vm1996_vm8, %v1969_v56, %v261_v29  ;;  %vm274_vm0 = vmor %vm272_vm9, %vm273_vm10  ;;  %v418_v62 = vmul.f32 %v1880_v4, %v285_v50 }
  0x9f   : > { %v289_v37 = vmul.f32 0.5, %v288_v28  ;;  %v416_v60 = vmul.f32 %v1882_v5, %v265_v49  ;;  %v2053_v21 = vmax.f32 %v1980_v7, 1e-24  ;;  %v2074_v49 = vmax.f32 %v1978_v2, 1e-24 }
  0xa0   : > { %v310_v41 = vsub.f32 1.5, %v309_v30  ;;  %v269_v42 = vmul.f32 0.5, %v268_v31  ;;  %v229_v43 = vpop.xlane.xlu1 %228  ;;  %v231_v58 = vpop.xlane.xlu2 %230 }
  0xa1   : > { %v290_v46 = vsub.f32 1.5, %v289_v37  ;;  %v227_v47 = vpop.xlane.xlu0 %226 }
  0xa2   : > { %v311_v52 = vmul.f32 %v1804_v6, %v310_v41  ;;  %v270_v54 = vsub.f32 1.5, %v269_v42  ;;  %v2057_v27 = vmax.f32 %v227_v47, 1e-24 }
  0xa3   : > { %v291_v57 = vmul.f32 %v1806_v12, %v290_v46 }
  0xa4   : > { %v315_v59 = vsel %vm2005_vm12, %v1804_v6, %v311_v52  ;;  %v271_v56 = vmul.f32 %v1808_v15, %v270_v54 }
  0xa5   : > { %v421_v3 = vmul.f32 %v1890_v9, %v315_v59  ;;  %v295_v61 = vsel %vm294_vm1, %v1806_v12, %v291_v57  ;;  %v2044_v12 = vmax.f32 %v229_v43, 1e-24 }
  0xa6   : > { %v419_v53 = vmul.f32 %v1892_v10, %v295_v61  ;;  %v275_v63 = vsel %vm274_vm0, %v1808_v15, %v271_v56  ;;  %v2041_v10 = vmax.f32 %v231_v58, 1e-24  ;;  %v2085_v58 = vmax.f32 %v1982_v8, 1e-24 }
  0xa7   : > { %v2029_v51 = vpack.c.bf16 %v421_v3, %v420_v44  ;;  %v417_v55 = vmul.f32 %v1894_v11, %v275_v63 }
  0xa8   : > { %v2032_v0 = vpack.c.bf16 %v419_v53, %v418_v62  ;;  %v235_v1 = vpop.xlane.xlu1 %234  ;;  %v237_v14 = vpop.xlane.xlu2 %236  ;;  %vm372_vm14 = vweird.f32 %v2041_v10 }
  0xa9   : > { %v2034_v6 = vpack.c.bf16 %v417_v55, %v416_v60  ;;  %v2036_v13 = vmax.f32 %v235_v1, 1e-24  ;;  %v233_v5 = vpop.xlane.xlu0 %232  ;;  %v254_v4 = vmax.f32 %v237_v14, 1e-24 }
  0xaa   : > { %v2039_v9 = vmax.f32 %v233_v5, 1e-24 }
  0xab   : > { %1809 = vrsqrt.f32 %v2036_v13  ;;  %vm402_vm2 = vweird.f32 %v254_v4  ;;  %vm392_vm12 = vweird.f32 %v2036_v13 }
  0xac   : > { %1811 = vrsqrt.f32 %v2039_v9  ;;  %vm382_vm8 = vweird.f32 %v2039_v9 }
  0xad   : > { %1813 = vrsqrt.f32 %v254_v4 }
  0xae   : > { %1815 = vrsqrt.f32 %v2041_v10 }
  0xaf   : > { %1817 = vrsqrt.f32 %v2044_v12 }
  0xb1   : > { %v239_v11 = vpop.xlane.xlu0 %238  ;;  %v2046_v15 = vpop.eup %1809 }
  0xb2   : > { %v255_v16 = vmax.f32 %v239_v11, 1e-24  ;;  %v2050_v20 = vpop.eup %1811  ;;  %v387_v22 = vmul.f32 %v2046_v15, %v2036_v13  ;;  %vm393_vm10 = vweird.f32 %v2046_v15 }
  0xb3   : > { %v1814_v23 = vpop.eup %1813  ;;  %v377_v28 = vmul.f32 %v2050_v20, %v2039_v9  ;;  %vm383_vm9 = vweird.f32 %v2050_v20  ;;  %vm2113_vm13 = vmor %vm392_vm12, %vm393_vm10  ;;  %vm322_vm10 = vweird.f32 %v2085_v58 }
  0xb4   : > { %1819 = vrsqrt.f32 %v255_v16  ;;  %v397_v29 = vmul.f32 %v1814_v23, %v254_v4  ;;  %v2061_v30 = vpop.eup %1815  ;;  %v388_v35 = vmul.f32 %v2046_v15, %v387_v22  ;;  %vm403_vm3 = vweird.f32 %v1814_v23  ;;  %vm2103_vm11 = vmor %vm382_vm8, %vm383_vm9 }
  0xb5   : > { %v2063_v31 = vpop.eup %1817  ;;  %1821 = vrsqrt.f32 %v2053_v21  ;;  %v378_v7 = vmul.f32 %v2050_v20, %v377_v28  ;;  %v367_v42 = vmul.f32 %v2061_v30, %v2041_v10  ;;  %vm2076_vm4 = vmor %vm402_vm2, %vm403_vm3  ;;  %vm412_vm5 = vweird.f32 %v255_v16 }
  0xb6   : > { %v398_v36 = vmul.f32 %v1814_v23, %v397_v29  ;;  %1823 = vrsqrt.f32 %v2057_v27  ;;  %v357_v43 = vmul.f32 %v2063_v31, %v2044_v12  ;;  %v389_v45 = vmul.f32 0.5, %v388_v35 }
  0xb7   : > { %v379_v46 = vmul.f32 0.5, %v378_v7  ;;  %v368_v59 = vmul.f32 %v2061_v30, %v367_v42  ;;  %1825 = vrsqrt.f32 %v2074_v49  ;;  %vm373_vm15 = vweird.f32 %v2061_v30 }
  0xb8   : > { %v399_v39 = vmul.f32 0.5, %v398_v36  ;;  %v358_v2 = vmul.f32 %v2063_v31, %v357_v43  ;;  %v390_v56 = vsub.f32 1.5, %v389_v45  ;;  %1827 = vrsqrt.f32 %v2085_v58  ;;  %vm2142_vm1 = vmor %vm372_vm14, %vm373_vm15 }
  0xb9   : > { %v380_v60 = vsub.f32 1.5, %v379_v46  ;;  %v369_v63 = vmul.f32 0.5, %v368_v59  ;;  %vm363_vm0 = vweird.f32 %v2063_v31  ;;  %vm342_vm2 = vweird.f32 %v2053_v21 }
  0xba   : > { %v1820_v37 = vpop.eup %1819  ;;  %v400_v47 = vsub.f32 1.5, %v399_v39  ;;  %v359_v55 = vmul.f32 0.5, %v358_v2  ;;  %v391_v5 = vmul.f32 %v2046_v15, %v390_v56  ;;  %vm362_vm3 = vweird.f32 %v2044_v12 }
  0xbb   : > { %v407_v41 = vmul.f32 %v1820_v37, %v255_v16  ;;  %v2080_v54 = vpop.eup %1821  ;;  %vm413_vm6 = vweird.f32 %v1820_v37  ;;  %v381_v14 = vmul.f32 %v2050_v20, %v380_v60  ;;  %v370_v29 = vsub.f32 1.5, %v369_v63 }
  0xbc   : > { %v401_v44 = vmul.f32 %v1814_v23, %v400_v47  ;;  %v2082_v57 = vpop.eup %1823  ;;  %v337_v62 = vmul.f32 %v2080_v54, %v2053_v21  ;;  %vm414_vm7 = vmor %vm412_vm5, %vm413_vm6  ;;  %v360_v35 = vsub.f32 1.5, %v359_v55  ;;  %vm352_vm6 = vweird.f32 %v2057_v27 }
  0xbd   : > { %v408_v48 = vmul.f32 %v1820_v37, %v407_v41  ;;  %v347_v8 = vmul.f32 %v2082_v57, %v2057_v27  ;;  %v385_v7 = vsel %vm2103_vm11, %v2050_v20, %v381_v14  ;;  %v371_v42 = vmul.f32 %v2061_v30, %v370_v29  ;;  %vm364_vm5 = vmor %vm362_vm3, %vm363_vm0 }
  0xbe   : > { %v405_v3 = vsel %vm2076_vm4, %v1814_v23, %v401_v44  ;;  %v338_v16 = vmul.f32 %v2080_v54, %v337_v62  ;;  %v428_v39 = vmul.f32 %v1935_v34, %v385_v7  ;;  %v361_v10 = vmul.f32 %v2063_v31, %v360_v35 }
  0xbf   : > { %v409_v50 = vmul.f32 0.5, %v408_v48  ;;  %v430_v1 = vmul.f32 %v1933_v33, %v405_v3  ;;  %v348_v22 = vmul.f32 %v2082_v57, %v347_v8  ;;  %v2111_v33 = vpop.eup %1825  ;;  %vm343_vm4 = vweird.f32 %v2080_v54 }
  0xc0   : > { %v2125_v36 = vpop.eup %1827  ;;  %v339_v13 = vmul.f32 0.5, %v338_v16  ;;  %v375_v48 = vsel %vm2142_vm1, %v2061_v30, %v371_v42  ;;  %v365_v52 = vsel %vm364_vm5, %v2063_v31, %v361_v10  ;;  %vm344_vm8 = vmor %vm342_vm2, %vm343_vm4  ;;  %vm333_vm12 = vweird.f32 %v2111_v33 }
  0xc1   : > { %v410_v61 = vsub.f32 1.5, %v409_v50  ;;  %v317_v41 = vmul.f32 %v2125_v36, %v2085_v58  ;;  %v427_v30 = vmul.f32 %v1917_v24, %v375_v48  ;;  %v426_v31 = vmul.f32 %v1919_v25, %v365_v52 }
  0xc2   : > { %v340_v45 = vsub.f32 1.5, %v339_v13  ;;  %vm323_vm11 = vweird.f32 %v2125_v36  ;;  %vm332_vm14 = vweird.f32 %v2074_v49  ;;  %v1838_v8 = vmov 0  }
  0xc3   : > { %v411_v53 = vmul.f32 %v1820_v37, %v410_v61  ;;  %v318_v47 = vmul.f32 %v2125_v36, %v317_v41  ;;  %v437_v56 = vpack.c.bf16 %v427_v30, %v426_v31  ;;  %vm334_vm15 = vmor %vm332_vm14, %vm333_vm12  ;;  %1778 = vset.pattern.permute.xlu2 %v1838_v8  ;;  %1779 = vset.pattern.permute.xlu0 %v1838_v8  ;;  %v1841_v29 = vmov 3  }
  0xc4   : > { %v341_v12 = vmul.f32 %v2080_v54, %v340_v45  ;;  %1780 = vset.pattern.permute.xlu1 %v1838_v8 }
  0xc5   : > { %v415_v4 = vsel %vm414_vm7, %v1820_v37, %v411_v53  ;;  %v349_v37 = vmul.f32 0.5, %v348_v22  ;;  %vm353_vm7 = vweird.f32 %v2082_v57  ;;  %v319_v59 = vmul.f32 0.5, %v318_v47 }
  0xc6   : > { %v431_v9 = vmul.f32 %v1943_v38, %v415_v4  ;;  %v395_v38 = vsel %vm2113_vm13, %v2046_v15, %v391_v5  ;;  %v327_v15 = vmul.f32 %v2111_v33, %v2074_v49  ;;  %vm354_vm9 = vmor %vm352_vm6, %vm353_vm7  ;;  %v345_v2 = vsel %vm344_vm8, %v2080_v54, %v341_v12 }
  0xc7   : > { %v429_v20 = vmul.f32 %v1931_v32, %v395_v38  ;;  %v350_v32 = vsub.f32 1.5, %v349_v37  ;;  %v320_v3 = vsub.f32 1.5, %v319_v59  ;;  %v424_v61 = vmul.f32 %v1904_v17, %v345_v2  ;;  %vm324_vm13 = vmor %vm322_vm10, %vm323_vm11 }
  0xc8   : > { %v2117_v28 = vpack.c.bf16 %v431_v9, %v430_v1  ;;  %v328_v34 = vmul.f32 %v2111_v33, %v327_v15  ;;  %v1839_v1 = vmov 1   ;;  %v1840_v4 = vmov 2  }
  0xc9   : > { %v2151_v46 = vpack.c.bf16 %v429_v20, %v428_v39  ;;  %v351_v44 = vmul.f32 %v2082_v57, %v350_v32  ;;  %v321_v25 = vmul.f32 %v2125_v36, %v320_v3  ;;  %v2292_v15 = vperm.slane %v1956_v40, 0 }
  0xca   : > { %440 = vmatpush.bf16.xpose.msra.mxu0 %v2117_v28  ;;  %1740 = vmatpush.bf16.xpose.msra.mxu1 %v2117_v28  ;;  %v329_v50 = vmul.f32 0.5, %v328_v34  ;;  %v2295_v20 = vperm.slane %v1956_v40, 1 }
  0xcb   : > { %1741 = vmatpush.bf16.xpose.msra.mxu2 %v2117_v28  ;;  %1742 = vmatpush.bf16.xpose.msra.mxu3 %v2117_v28  ;;  %v355_v21 = vsel %vm354_vm9, %v2082_v57, %v351_v44 }
  0xcc   : > { %v330_v60 = vsub.f32 1.5, %v329_v50  ;;  %v425_v62 = vmul.f32 %v1921_v26, %v355_v21  ;;  %v325_v26 = vsel %vm324_vm13, %v2125_v36, %v321_v25 }
  0xcd   : > { %v422_v57 = vmul.f32 %v1908_v19, %v325_v26 }
  0xce   : > { %v331_v24 = vmul.f32 %v2111_v33, %v330_v60  ;;  %v436_v27 = vpack.c.bf16 %v425_v62, %v424_v61 }
  0xd0   : > { %v335_v17 = vsel %vm334_vm15, %v2111_v33, %v331_v24 }
  0xd1   : > { %v423_v54 = vmul.f32 %v1906_v18, %v335_v17 }
  0xd2   : > { %441 = vmatpush.bf16.xpose.msra.mxu0 %v2151_v46  ;;  %1743 = vmatpush.bf16.xpose.msra.mxu1 %v2151_v46 }
  0xd3   : > { %1744 = vmatpush.bf16.xpose.msra.mxu2 %v2151_v46  ;;  %1745 = vmatpush.bf16.xpose.msra.mxu3 %v2151_v46  ;;  %v435_v58 = vpack.c.bf16 %v423_v54, %v422_v57 }
  0xda   : > { %442 = vmatpush.bf16.xpose.msra.mxu0 %v437_v56  ;;  %1746 = vmatpush.bf16.xpose.msra.mxu1 %v437_v56 }
  0xdb   : > { %1747 = vmatpush.bf16.xpose.msra.mxu2 %v437_v56  ;;  %1748 = vmatpush.bf16.xpose.msra.mxu3 %v437_v56 }
  0xe2   : > { %443 = vmatpush.bf16.xpose.msra.mxu0 %v436_v27  ;;  %1749 = vmatpush.bf16.xpose.msra.mxu1 %v436_v27 }
  0xe3   : > { %1750 = vmatpush.bf16.xpose.msra.mxu2 %v436_v27  ;;  %1751 = vmatpush.bf16.xpose.msra.mxu3 %v436_v27 }
  0xea   : > { %444 = vmatpush.bf16.xpose.msra.mxu0 %v435_v58  ;;  %1752 = vmatpush.bf16.xpose.msra.mxu1 %v435_v58 }
  0xeb   : > { %1753 = vmatpush.bf16.xpose.msra.mxu2 %v435_v58  ;;  %1754 = vmatpush.bf16.xpose.msra.mxu3 %v435_v58 }
  0xf2   : > { %445 = vmatpush.bf16.xpose.msra.mxu0 %v2029_v51  ;;  %1755 = vmatpush.bf16.xpose.msra.mxu1 %v2029_v51 }
  0xf3   : > { %1756 = vmatpush.bf16.xpose.msra.mxu2 %v2029_v51  ;;  %1757 = vmatpush.bf16.xpose.msra.mxu3 %v2029_v51 }
  0xfa   : > { %446 = vmatpush.bf16.xpose.msra.mxu0 %v2032_v0  ;;  %1758 = vmatpush.bf16.xpose.msra.mxu1 %v2032_v0 }
  0xfb   : > { %1759 = vmatpush.bf16.xpose.msra.mxu2 %v2032_v0  ;;  %1760 = vmatpush.bf16.xpose.msra.mxu3 %v2032_v0 }
 0x102   : > { %447 = vmatpush.bf16.xpose.msra.mxu0 %v2034_v6  ;;  %1761 = vmatpush.bf16.xpose.msra.mxu1 %v2034_v6 }
 0x103   : > { %1762 = vmatpush.bf16.xpose.msra.mxu2 %v2034_v6  ;;  %1763 = vmatpush.bf16.xpose.msra.mxu3 %v2034_v6 }
 0x109   : > { %448 = vmatmul.bf16.vlgmr.msra.gmra.mxu0 %v2034_v6  ;;  %458 = vmatmul.bf16.vlgmr.msra.gmra.mxu1 %v2029_v51 }
 0x10a   : > { %468 = vmatmul.bf16.vlgmr.msra.gmra.mxu2 %v436_v27  ;;  %478 = vmatmul.bf16.vlgmr.msra.gmra.mxu3 %v2151_v46 }
 0x113   : > { %v2203_v18 = vpop.trf.xlu1 }
 0x114   : > { %523 = vperm.xlu2 %1778, %v2203_v18   ;;  %vm747_vm2 = vcmp.lt.f32.partialorder %v2203_v18, 0.0 }
 0x115   : > { %v764_v34 = vsel %vm747_vm2, 1, %v1838_v8 }
 0x119   : > { %453 = vmatmul.bf16.gmra.mxu0 %v2032_v0  ;;  %463 = vmatmul.bf16.gmra.mxu1 %v435_v58 }
 0x11a   : > { %473 = vmatmul.bf16.gmra.mxu2 %v437_v56  ;;  %483 = vmatmul.bf16.gmra.mxu3 %v2117_v28 }
 0x11b   : > { %v2207_v19 = vpop.trf.xlu1 }
 0x11c   : > { %528 = vperm.xlu0 %1779, %v2207_v19   ;;  %vm748_vm0 = vcmp.lt.f32.partialorder %v2207_v19, 0.0 }
 0x11d   : > { %v765_v36 = vsel %vm748_vm0, 1, %v1838_v8  ;;  %vm763_vm0 = vcmp.lt.f32.partialorder %v1956_v40, 0.0  ;;  %v4083_v40 = vmov 0 }
 0x123   : > { %v2211_v6 = vpop.trf.xlu1 }
 0x124   : > { %533 = vperm.xlu2 %1778, %v2211_v6   ;;  %vm749_vm4 = vcmp.lt.f32.partialorder %v2211_v6, 0.0 }
 0x125   : > { %v766_v50 = vsel %vm749_vm4, 1, %v1838_v8  ;;  %vm3854_vm4 = vmmov 1  }
 0x12b   : > { %v2214_v51 = vpop.trf.xlu1 }
 0x12c   : > { %538 = vperm.xlu2 %1778, %v2214_v51   ;;  %vm750_vm6 = vcmp.lt.f32.partialorder %v2214_v51, 0.0 }
 0x12d   : > { %v767_v26 = vsel %vm750_vm6, 1, %v1838_v8 }
 0x133   : > { %v2217_v49 = vpop.trf.xlu1 }
 0x134   : > { %543 = vperm.xlu2 %1778, %v2217_v49   ;;  %vm751_vm1 = vcmp.lt.f32.partialorder %v2217_v49, 0.0 }
 0x135   : > { %v768_v39 = vsel %vm751_vm1, 1, %v1838_v8 }
 0x13b   : > { %v2220_v0 = vpop.trf.xlu1 }
 0x13c   : > { %548 = vperm.xlu0 %1779, %v2220_v0   ;;  %vm752_vm8 = vcmp.lt.f32.partialorder %v2220_v0, 0.0 }
 0x143   : > { %v2223_v53 = vpop.trf.xlu1 }
 0x144   : > { %553 = vperm.xlu2 %1778, %v2223_v53   ;;  %vm753_vm3 = vcmp.lt.f32.partialorder %v2223_v53, 0.0 }
 0x145   : > { %v770_v47 = vsel %vm753_vm3, 1, %v1838_v8 }
 0x14b   : > { %v2226_v63 = vpop.trf.xlu1 }
 0x14c   : > { %558 = vperm.xlu0 %1779, %v2226_v63   ;;  %vm754_vm10 = vcmp.lt.f32.partialorder %v2226_v63, 0.0 }
 0x153   : > { %v2229_v55 = vpop.trf.xlu1 }
 0x154   : > { %563 = vperm.xlu2 %1778, %v2229_v55   ;;  %1781 = vset.pattern.permute.xlu0 %v1839_v1  ;;  %vm755_vm5 = vcmp.lt.f32.partialorder %v2229_v55, 0.0 }
 0x155   : > { %619 = vperm.xlu0 %1781, %v2203_v18   ;;  %v772_v2 = vsel %vm755_vm5, 1, %v1838_v8 }
 0x15b   : > { %v2233_v5 = vpop.trf.xlu1 }
 0x15c   : > { %1782 = vset.pattern.permute.xlu2 %v1839_v1  ;;  %568 = vperm.xlu1 %1780, %v2233_v5   ;;  %vm756_vm12 = vcmp.lt.f32.partialorder %v2233_v5, 0.0 }
 0x15d   : > { %623 = vperm.xlu2 %1782, %v2207_v19   ;;  %631 = vperm.xlu0 %1781, %v2214_v51  }
 0x163   : > { %v2238_v14 = vpop.trf.xlu1 }
 0x164   : > { %1793 = vset.pattern.permute.xlu1 %v1840_v4  ;;  %vm757_vm7 = vcmp.lt.f32.partialorder %v2238_v14, 0.0 }
 0x165   : > { %627 = vperm.xlu2 %1782, %v2211_v6   ;;  %639 = vperm.xlu0 %1781, %v2220_v0   ;;  %v774_v58 = vsel %vm757_vm7, 1, %v1838_v8 }
 0x16b   : > { %v2243_v11 = vpop.trf.xlu1 }
 0x16c   : > { %924 = vperm.xlu1 %1793, %v2243_v11   ;;  %vm758_vm13 = vcmp.lt.f32.partialorder %v2243_v11, 0.0 }
 0x16d   : > { %635 = vperm.xlu2 %1782, %v2217_v49   ;;  %647 = vperm.xlu0 %1781, %v2226_v63  }
 0x16e   : > { %v2257_v22 = vpop.permute.xlu2 %523 }
 0x16f   : > { %v602_v21 = vsub.f32 %v2257_v22, %v2292_v15 }
 0x171   : > { %v699_v24 = vmul.f32 %v602_v21, %v602_v21 }
 0x173   : > { %v2248_v9 = vpop.trf.xlu1 }
 0x174   : > { %vm759_vm9 = vcmp.lt.f32.partialorder %v2248_v9, 0.0 }
 0x175   : > { %643 = vperm.xlu2 %1782, %v2223_v53   ;;  %655 = vperm.xlu0 %1781, %v2233_v5  }
 0x17b   : > { %v2252_v16 = vpop.trf.xlu1 }
 0x17c   : > { %vm760_vm14 = vcmp.lt.f32.partialorder %v2252_v16, 0.0 }
 0x17d   : > { %1783 = vset.pattern.permute.xlu2 %v1838_v8  ;;  %663 = vperm.xlu0 %1781, %v2243_v11  }
 0x17e   : > { %578 = vperm.xlu2 %1783, %v2243_v11   ;;  %v534_v23 = vpop.permute.xlu2 %533 }
 0x17f   : > { %v604_v48 = vsub.f32 %v534_v23, %v2292_v15 }
 0x181   : > { %v701_v30 = vmul.f32 %v604_v48, %v604_v48 }
 0x183   : > { %v2259_v33 = vpop.trf.xlu1 }
 0x184   : > { %936 = vperm.xlu1 %1793, %v2259_v33   ;;  %vm761_vm11 = vcmp.lt.f32.partialorder %v2259_v33, 0.0 }
 0x185   : > { %671 = vperm.xlu0 %1781, %v2252_v16  }
 0x186   : > { %1784 = vset.pattern.permute.xlu2 %v1839_v1  ;;  %v2271_v35 = vpop.permute.xlu2 %538 }
 0x187   : > { %651 = vperm.xlu2 %1784, %v2229_v55  }
 0x18b   : > { %v2264_v28 = vpop.trf.xlu1 }
 0x18c   : > { %1795 = vset.pattern.permute.xlu1 %v1841_v29  ;;  %vm762_vm15 = vcmp.lt.f32.partialorder %v2264_v28, 0.0 }
 0x18d   : > { %1014 = vperm.xlu1 %1795, %v2207_v19   ;;  %679 = vperm.xlu0 %1781, %v2264_v28  }
 0x18e   : > { %v544_v38 = vpop.permute.xlu2 %543  ;;  %v529_v13 = vpop.permute.xlu0 %528 }
 0x18f   : > { %1785 = vset.pattern.permute.xlu2 %v1838_v8  ;;  %v603_v41 = vsub.f32 %v529_v13, %v2292_v15  ;;  %v606_v56 = vsub.f32 %v544_v38, %v2292_v15 }
 0x190   : > { %588 = vperm.xlu2 %1785, %v2252_v16  }
 0x191   : > { %v700_v45 = vmul.f32 %v603_v41, %v603_v41  ;;  %v703_v25 = vmul.f32 %v606_v56, %v606_v56 }
 0x195   : > { %1026 = vperm.xlu1 %1795, %v2217_v49   ;;  %1789 = vset.pattern.permute.xlu0 %v1838_v8 }
 0x196   : > { %573 = vperm.xlu0 %1789, %v2238_v14  }
 0x198   : > { %1786 = vset.pattern.permute.xlu2 %v1839_v1 }
 0x199   : > { %659 = vperm.xlu2 %1786, %v2238_v14  }
 0x19d   : > { %1034 = vperm.xlu1 %1795, %v2223_v53  }
 0x19e   : > { %583 = vperm.xlu0 %1789, %v2248_v9   ;;  %v554_v7 = vpop.permute.xlu2 %553 }
 0x19f   : > { %v608_v22 = vsub.f32 %v554_v7, %v2292_v15 }
 0x1a1   : > { %1787 = vset.pattern.permute.xlu2 %v1838_v8  ;;  %v705_v41 = vmul.f32 %v608_v22, %v608_v22 }
 0x1a2   : > { %598 = vperm.xlu2 %1787, %v2264_v28  }
 0x1a5   : > { %1046 = vperm.xlu1 %1795, %v2233_v5  }
 0x1a6   : > { %593 = vperm.xlu0 %1789, %v2259_v33  }
 0x1aa   : > { %1788 = vset.pattern.permute.xlu2 %v1839_v1  ;;  %v605_v1 = vsub.f32 %v2271_v35, %v2292_v15 }
 0x1ab   : > { %667 = vperm.xlu2 %1788, %v2248_v9  }
 0x1ad   : > { %1058 = vperm.xlu1 %1795, %v2248_v9  }
 0x1ae   : > { %v2287_v37 = vpop.permute.xlu2 %563  ;;  %784 = vperm.xlu0 %1789, %v765_v36   ;;  %v549_v42 = vpop.permute.xlu0 %548 }
 0x1af   : > { %v610_v56 = vsub.f32 %v2287_v37, %v2292_v15 }
 0x1b3   : > { %675 = vperm.xlu2 %1788, %v2259_v33  }
 0x1b5   : > { %1070 = vperm.xlu1 %1795, %v2264_v28  }
 0x1b6   : > { %793 = vperm.xlu0 %1789, %v768_v39   ;;  %v702_v39 = vmul.f32 %v605_v1, %v605_v1  ;;  %v775_v1 = vsel %vm758_vm13, 1, %v1838_v8 }
 0x1b7   : > { %v624_v10 = vpop.permute.xlu2 %623 }
 0x1b8   : > { %v684_v43 = vsub.f32 %v624_v10, %v2295_v20 }
 0x1ba   : > { %v716_v32 = vmul.f32 %v684_v43, %v684_v43 }
 0x1bb   : > { %1790 = vset.pattern.permute.xlu2 %v1838_v8 }
 0x1bc   : > { %v2305_v46 = vadd.f32 %v716_v32, %v700_v45  ;;  %781 = vperm.xlu2 %1790, %v764_v34   ;;  %v769_v45 = vsel %vm752_vm8, 1, %v1838_v8  ;;  %v776_v32 = vsel %vm759_vm9, 1, %v1838_v8  ;;  %v607_v34 = vsub.f32 %v549_v42, %v2292_v15 }
 0x1be   : > { %799 = vperm.xlu0 %1789, %v770_v47   ;;  %v559_v52 = vpop.permute.xlu0 %558 }
 0x1bf   : > { %v628_v12 = vpop.permute.xlu2 %627  ;;  %v609_v42 = vsub.f32 %v559_v52, %v2292_v15 }
 0x1c0   : > { %v685_v44 = vsub.f32 %v628_v12, %v2295_v20 }
 0x1c2   : > { %v717_v31 = vmul.f32 %v685_v44, %v685_v44  ;;  %v704_v44 = vmul.f32 %v607_v34, %v607_v34 }
 0x1c4   : > { %v2313_v59 = vadd.f32 %v717_v31, %v701_v30  ;;  %787 = vperm.xlu2 %1790, %v766_v50   ;;  %v771_v31 = vsel %vm754_vm10, 1, %v1838_v8 }
 0x1c6   : > { %805 = vperm.xlu0 %1789, %v772_v2   ;;  %v778_v2 = vsel %vm761_vm11, 1, %v1838_v8 }
 0x1c7   : > { %v636_v60 = vpop.permute.xlu2 %635  ;;  %v620_v3 = vpop.permute.xlu0 %619 }
 0x1c8   : > { %v687_v61 = vsub.f32 %v636_v60, %v2295_v20  ;;  %v683_v62 = vsub.f32 %v620_v3, %v2295_v20 }
 0x1ca   : > { %v719_v27 = vmul.f32 %v687_v61, %v687_v61  ;;  %v715_v17 = vmul.f32 %v683_v62, %v683_v62  ;;  %v706_v61 = vmul.f32 %v609_v42, %v609_v42 }
 0x1cc   : > { %v2324_v54 = vadd.f32 %v719_v27, %v703_v25  ;;  %v2326_v57 = vadd.f32 %v715_v17, %v699_v24  ;;  %790 = vperm.xlu2 %1790, %v767_v26   ;;  %v773_v25 = vsel %vm756_vm12, 1, %v1838_v8  ;;  %v707_v27 = vmul.f32 %v610_v56, %v610_v56 }
 0x1ce   : > { %811 = vperm.xlu0 %1789, %v774_v58   ;;  %vm1105_vm6 = vcmp.lt.f32.partialorder %v2326_v57, 625.0  ;;  %vm1349_vm8 = vcmp.lt.f32.partialorder %v2326_v57, 900.0  ;;  %vm1487_vm10 = vcmp.lt.f32.partialorder %v2326_v57, 1225.0  ;;  %v3957_v57 = vmov 0 }
 0x1cf   : > { %v644_v23 = vpop.permute.xlu2 %643  ;;  %v632_v38 = vpop.permute.xlu0 %631 }
 0x1d0   : > { %v689_v36 = vsub.f32 %v644_v23, %v2295_v20  ;;  %v686_v13 = vsub.f32 %v632_v38, %v2295_v20 }
 0x1d2   : > { %v721_v10 = vmul.f32 %v689_v36, %v689_v36  ;;  %v718_v43 = vmul.f32 %v686_v13, %v686_v13 }
 0x1d4   : > { %v2337_v35 = vadd.f32 %v721_v10, %v705_v41  ;;  %v2339_v7 = vadd.f32 %v718_v43, %v702_v39  ;;  %796 = vperm.xlu2 %1790, %v769_v45   ;;  %v777_v41 = vsel %vm760_vm14, 1, %v1838_v8  ;;  %vm1107_vm14 = vcmp.lt.f32.partialorder %v2313_v59, 625.0 }
 0x1d6   : > { %817 = vperm.xlu0 %1789, %v776_v32  }
 0x1d7   : > { %v640_v47 = vpop.permute.xlu0 %639 }
 0x1d8   : > { %v688_v48 = vsub.f32 %v640_v47, %v2295_v20  ;;  %v579_v12 = vpop.permute.xlu2 %578 }
 0x1d9   : > { %v613_v22 = vsub.f32 %v579_v12, %v2292_v15 }
 0x1da   : > { %v720_v30 = vmul.f32 %v688_v48, %v688_v48  ;;  %v779_v48 = vsel %vm762_vm15, 1, %v1838_v8 }
 0x1db   : > { %v710_v36 = vmul.f32 %v613_v22, %v613_v22 }
 0x1dc   : > { %v2347_v50 = vadd.f32 %v720_v30, %v704_v44  ;;  %802 = vperm.xlu2 %1790, %v771_v31  }
 0x1de   : > { %823 = vperm.xlu0 %1789, %v778_v2  }
 0x1df   : > { %v648_v21 = vpop.permute.xlu0 %647 }
 0x1e0   : > { %v690_v60 = vsub.f32 %v648_v21, %v2295_v20 }
 0x1e1   : > { %v652_v3 = vpop.permute.xlu2 %651 }
 0x1e2   : > { %v722_v62 = vmul.f32 %v690_v60, %v690_v60  ;;  %v691_v24 = vsub.f32 %v652_v3, %v2295_v20 }
 0x1e4   : > { %v2357_v17 = vadd.f32 %v722_v62, %v706_v61  ;;  %v723_v52 = vmul.f32 %v691_v24, %v691_v24  ;;  %808 = vperm.xlu2 %1790, %v773_v25  }
 0x1e6   : > { %v2359_v26 = vadd.f32 %v723_v52, %v707_v27  ;;  %1791 = vset.pattern.permute.xlu0 %v1840_v4 }
 0x1e7   : > { %880 = vperm.xlu0 %1791, %v2203_v18   ;;  %v2363_v37 = vpop.permute.xlu0 %655 }
 0x1ea   : > { %v589_v58 = vpop.permute.xlu2 %588 }
 0x1eb   : > { %v615_v43 = vsub.f32 %v589_v58, %v2292_v15 }
 0x1ec   : > { %814 = vperm.xlu2 %1790, %v775_v1  }
 0x1ed   : > { %v712_v34 = vmul.f32 %v615_v43, %v615_v43  ;;  %v3955_v43 = vmov 0 }
 0x1ef   : > { %892 = vperm.xlu0 %1791, %v2214_v51   ;;  %v664_v23 = vpop.permute.xlu0 %663 }
 0x1f0   : > { %v694_v38 = vsub.f32 %v664_v23, %v2295_v20 }
 0x1f2   : > { %v726_v13 = vmul.f32 %v694_v38, %v694_v38 }
 0x1f3   : > { %v660_v39 = vpop.permute.xlu2 %659 }
 0x1f4   : > { %v2372_v10 = vadd.f32 %v726_v13, %v710_v36  ;;  %820 = vperm.xlu2 %1790, %v777_v41   ;;  %v693_v3 = vsub.f32 %v660_v39, %v2295_v20  ;;  %v3951_v13 = vmov 0 }
 0x1f6   : > { %v725_v24 = vmul.f32 %v693_v3, %v693_v3 }
 0x1f7   : > { %900 = vperm.xlu0 %1791, %v2220_v0   ;;  %v672_v45 = vpop.permute.xlu0 %671 }
 0x1f8   : > { %v696_v32 = vsub.f32 %v672_v45, %v2295_v20 }
 0x1fa   : > { %v728_v47 = vmul.f32 %v696_v32, %v696_v32 }
 0x1fc   : > { %v2379_v12 = vadd.f32 %v728_v47, %v712_v34  ;;  %826 = vperm.xlu2 %1790, %v779_v48   ;;  %v599_v44 = vpop.permute.xlu2 %598 }
 0x1fd   : > { %v617_v30 = vsub.f32 %v599_v44, %v2292_v15 }
 0x1ff   : > { %908 = vperm.xlu0 %1791, %v2226_v63   ;;  %v680_v31 = vpop.permute.xlu0 %679  ;;  %v714_v42 = vmul.f32 %v617_v30, %v617_v30  ;;  %v4045_v30 = vmov 0 }
 0x200   : > { %v698_v2 = vsub.f32 %v680_v31, %v2295_v20  ;;  %v3969_v31 = vmov 0 }
 0x202   : > { %v730_v21 = vmul.f32 %v698_v2, %v698_v2  ;;  %v3972_v2 = vmov 0 }
 0x204   : > { %v2384_v56 = vadd.f32 %v730_v21, %v714_v42  ;;  %1792 = vset.pattern.permute.xlu2 %v1840_v4  ;;  %v844_v4 = vsel %vm763_vm0, 1, %v1838_v8  ;;  %vm1351_vm0 = vcmp.lt.f32.partialorder %v2313_v59, 900.0  ;;  %v3975_v42 = vmov 0  ;;  %v569_v21 = vpop.permute.xlu1 %568 }
 0x205   : > { %884 = vperm.xlu2 %1792, %v2207_v19   ;;  %v668_v60 = vpop.permute.xlu2 %667  ;;  %v845_v1 = vperm.slane %v844_v4, 0 }
 0x206   : > { %v695_v19 = vsub.f32 %v668_v60, %v2295_v20 }
 0x207   : > { %916 = vperm.xlu0 %1791, %v2233_v5   ;;  %vm2402_vm1 = vcmp.eq.s32.totalorder %v845_v1, 1 }
 0x208   : > { %v574_v61 = vpop.permute.xlu0 %573  ;;  %v727_v22 = vmul.f32 %v695_v19, %v695_v19  ;;  %v3997_v19 = vmov 0 }
 0x209   : > { %v612_v62 = vsub.f32 %v574_v61, %v2292_v15  ;;  %v3982_v61 = vmov 0 }
 0x20b   : > { %v709_v25 = vmul.f32 %v612_v62, %v612_v62  ;;  %v3984_v62 = vmov 0 }
 0x20d   : > { %v2392_v27 = vadd.f32 %v725_v24, %v709_v25  ;;  %888 = vperm.xlu2 %1792, %v2211_v6   ;;  %v676_v52 = vpop.permute.xlu2 %675  ;;  %v3987_v24 = vmov 0  ;;  %v3993_v25 = vmov 0 }
 0x20e   : > { %v697_v8 = vsub.f32 %v676_v52, %v2295_v20 }
 0x20f   : > { %928 = vperm.xlu0 %1791, %v2248_v9  }
 0x210   : > { %v584_v58 = vpop.permute.xlu0 %583  ;;  %v729_v39 = vmul.f32 %v697_v8, %v697_v8  ;;  %v4014_v8 = vmov 0 }
 0x211   : > { %v614_v5 = vsub.f32 %v584_v58, %v2292_v15  ;;  %v692_v58 = vsub.f32 %v2363_v37, %v2295_v20  ;;  %v4002_v20 = vmov 0 }
 0x213   : > { %v711_v23 = vmul.f32 %v614_v5, %v614_v5  ;;  %v611_v5 = vsub.f32 %v569_v21, %v2292_v15  ;;  %v724_v1 = vmul.f32 %v692_v58, %v692_v58  ;;  %v4027_v21 = vmov 0 }
 0x215   : > { %v2399_v38 = vadd.f32 %v727_v22, %v711_v23  ;;  %896 = vperm.xlu2 %1792, %v2217_v49   ;;  %v708_v37 = vmul.f32 %v611_v5, %v611_v5 }
 0x216   : > { %v782_v36 = vpop.permute.xlu2 %781 }
 0x217   : > { %vm828_vm2 = vcmp.eq.s32.totalorder %v782_v36, 1  ;;  %940 = vperm.xlu0 %1791, %v2264_v28   ;;  %v3953_v28 = vmov 0  ;;  %v740_v23 = vadd.f32 %v724_v1, %v708_v37  ;;  %v4048_v37 = vmov 0 }
 0x218   : > { %vm847_vm3 = vmor %vm828_vm2, %vm2402_vm1  ;;  %v594_v9 = vpop.permute.xlu0 %593 }
 0x219   : > { %vm863_vm5 = vmxor %vm847_vm3, %vm3854_vm4  ;;  %v616_v49 = vsub.f32 %v594_v9, %v2292_v15  ;;  %v4005_v15 = vmov 0  ;;  %v4051_v9 = vmov 0 }
 0x21a   : > { %vm2413_vm7 = vmand %vm1105_vm6, %vm863_vm5 }
 0x21b   : > { %v3952_v13 = vsel %vm2413_vm7, 4294967295, %v3951_v13  ;;  %vm2418_vm9 = vmand %vm1349_vm8, %vm863_vm5  ;;  %v713_v41 = vmul.f32 %v616_v49, %v616_v49 }
 0x21c   : > { %v3954_v28 = vsel %vm2418_vm9, 4294967295, %v3953_v28  ;;  %vm2423_vm11 = vmand %vm1487_vm10, %vm863_vm5  ;;  %vm1489_vm5 = vcmp.lt.f32.partialorder %v2313_v59, 1225.0  ;;  %v4041_v59 = vmov 0 }
 0x21d   : > { %v3956_v43 = vsel %vm2423_vm11, 4294967295, %v3955_v43  ;;  %v2427_v45 = vadd.f32 %v729_v39, %v713_v41  ;;  %904 = vperm.xlu2 %1792, %v2223_v53   ;;  %v3959_v53 = vmov 0  ;;  %vm1352_vm11 = vcmp.lt.f32.partialorder %v2339_v7, 900.0  ;;  %v1829_v39 = vld [vmem:[%s1953_s18] sm:$0xff] }
 0x21e   : > { %v788_v32 = vpop.permute.xlu2 %787  ;;  %v2616_v41 = vperm.slane %v1829_v39, 3  ;;  %v2695_v58 = vperm.slane %v1829_v39, 2 }
 0x21f   : > { %vm830_vm12 = vcmp.eq.s32.totalorder %v788_v32, 1  ;;  %1796 = vset.pattern.permute.xlu0 %v1841_v29  ;;  %v4021_v32 = vmov 0 }
 0x220   : > { %vm849_vm13 = vmor %vm830_vm12, %vm2402_vm1  ;;  %1018 = vperm.xlu0 %1796, %v2211_v6   ;;  %v785_v34 = vpop.permute.xlu0 %784  ;;  %v3961_v6 = vmov 0  ;;  %vm1106_vm12 = vcmp.lt.f32.partialorder %v2305_v46, 625.0 }
 0x221   : > { %vm865_vm15 = vmxor %vm849_vm13, %vm3854_vm4  ;;  %vm829_vm3 = vcmp.eq.s32.totalorder %v785_v34, 1 }
 0x222   : > { %vm2437_vm2 = vmand %vm1107_vm14, %vm865_vm15 }
 0x223   : > { %v3958_v57 = vsel %vm2437_vm2, 4294967295, %v3957_v57  ;;  %vm2442_vm6 = vmand %vm1351_vm0, %vm865_vm15  ;;  %vm1354_vm2 = vcmp.lt.f32.partialorder %v2347_v50, 900.0 }
 0x224   : > { %v3960_v53 = vsel %vm2442_vm6, 4294967295, %v3959_v53  ;;  %vm2446_vm8 = vmand %vm1489_vm5, %vm865_vm15  ;;  %vm1350_vm15 = vcmp.lt.f32.partialorder %v2305_v46, 900.0 }
 0x225   : > { %v3962_v6 = vsel %vm2446_vm8, 4294967295, %v3961_v6  ;;  %vm848_vm10 = vmor %vm829_vm3, %vm2402_vm1  ;;  %912 = vperm.xlu2 %1792, %v2229_v55   ;;  %vm1488_vm3 = vcmp.lt.f32.partialorder %v2305_v46, 1225.0 }
 0x226   : > { %vm864_vm13 = vmxor %vm848_vm10, %vm3854_vm4  ;;  %v791_v47 = vpop.permute.xlu2 %790 }
 0x227   : > { %vm2455_vm14 = vmand %vm1106_vm12, %vm864_vm13  ;;  %vm831_vm5 = vcmp.eq.s32.totalorder %v791_v47, 1  ;;  %v2626_v47 = vpop.f32.mrf.mxu0 }
 0x228   : > { %1038 = vperm.xlu0 %1796, %v2226_v63   ;;  %v794_v48 = vpop.permute.xlu0 %793  ;;  %vm2461_vm0 = vmand %vm1350_vm15, %vm864_vm13  ;;  %vm1108_vm15 = vcmp.lt.f32.partialorder %v2339_v7, 625.0 }
 0x229   : > { %vm2466_vm8 = vmand %vm1488_vm3, %vm864_vm13  ;;  %vm832_vm13 = vcmp.eq.s32.totalorder %v794_v48, 1 }
 0x22a   : > { %vm850_vm10 = vmor %vm831_vm5, %vm2402_vm1  ;;  %vm1490_vm5 = vcmp.lt.f32.partialorder %v2339_v7, 1225.0  ;;  %v3980_v7 = vmov 0 }
 0x22b   : > { %vm866_vm12 = vmxor %vm850_vm10, %vm3854_vm4 }
 0x22c   : > { %vm2475_vm6 = vmand %vm1108_vm15, %vm866_vm12  ;;  %vm1109_vm15 = vcmp.lt.f32.partialorder %v2324_v54, 625.0 }
 0x22d   : > { %920 = vperm.xlu2 %1792, %v2238_v14   ;;  %v3970_v31 = vsel %vm2475_vm6, 4294967295, %v3969_v31  ;;  %vm2481_vm3 = vmand %vm1352_vm11, %vm866_vm12  ;;  %vm1353_vm11 = vcmp.lt.f32.partialorder %v2324_v54, 900.0 }
 0x22e   : > { %v797_v63 = vpop.permute.xlu2 %796  ;;  %3971 = vst [vmem:[#allocation2_spill] sm:$0xff] %v3970_v31  ;;  %v3973_v2 = vsel %vm2481_vm3, 4294967295, %v3972_v2  ;;  %vm2486_vm9 = vmand %vm1490_vm5, %vm866_vm12  ;;  %v4134_v31 = vmov 0 }
 0x22f   : > { %3974 = vst [vmem:[#allocation3_spill] sm:$0xff] %v3973_v2  ;;  %v3976_v42 = vsel %vm2486_vm9, 4294967295, %v3975_v42  ;;  %vm851_vm10 = vmor %vm832_vm13, %vm2402_vm1  ;;  %vm1491_vm13 = vcmp.lt.f32.partialorder %v2324_v54, 1225.0  ;;  %vm833_vm5 = vcmp.eq.s32.totalorder %v797_v63, 1  ;;  %v2521_v54 = vpop.permute.xlu1 %924  ;;  %v451_v5 = vpop.f32.mrf.mxu0 }
 0x230   : > { %1050 = vperm.xlu0 %1796, %v2238_v14   ;;  %v800_v46 = vpop.permute.xlu0 %799  ;;  %3977 = vst [vmem:[#allocation4_spill] sm:$0xff] %v3976_v42  ;;  %vm867_vm6 = vmxor %vm851_vm10, %vm3854_vm4  ;;  %v4099_v14 = vmov 0 }
 0x231   : > { %vm2494_vm7 = vmand %vm1109_vm15, %vm867_vm6 }
 0x232   : > { %vm2500_vm12 = vmand %vm1353_vm11, %vm867_vm6  ;;  %vm1110_vm11 = vcmp.lt.f32.partialorder %v2347_v50, 625.0 }
 0x233   : > { %v3981_v7 = vsel %vm2500_vm12, 4294967295, %v3980_v7  ;;  %vm2506_vm10 = vmand %vm1491_vm13, %vm867_vm6  ;;  %vm834_vm12 = vcmp.eq.s32.totalorder %v800_v46, 1  ;;  %vm1492_vm13 = vcmp.lt.f32.partialorder %v2347_v50, 1225.0  ;;  %v3995_v50 = vmov 0 }
 0x234   : > { %v3983_v61 = vsel %vm2506_vm10, 4294967295, %v3982_v61  ;;  %vm852_vm15 = vmor %vm833_vm5, %vm2402_vm1  ;;  %v4056_v46 = vmov 0 }
 0x235   : > { %932 = vperm.xlu2 %1792, %v2252_v16   ;;  %vm868_vm9 = vmxor %vm852_vm15, %vm3854_vm4 }
 0x236   : > { %v803_v60 = vpop.permute.xlu2 %802  ;;  %vm2515_vm3 = vmand %vm1110_vm11, %vm868_vm9  ;;  %vm1111_vm11 = vcmp.lt.f32.partialorder %v2337_v35, 625.0 }
 0x237   : > { %v3985_v62 = vsel %vm2515_vm3, 4294967295, %v3984_v62  ;;  %vm2523_vm6 = vmand %vm1354_vm2, %vm868_vm9  ;;  %vm1355_vm2 = vcmp.lt.f32.partialorder %v2337_v35, 900.0  ;;  %v2548_v4 = vpop.permute.xlu1 %936 }
 0x238   : > { %1062 = vperm.xlu0 %1796, %v2252_v16   ;;  %v806_v3 = vpop.permute.xlu0 %805  ;;  %3986 = vst [vmem:[#allocation5_spill] sm:$0xff] %v3985_v62  ;;  %v3988_v24 = vsel %vm2523_vm6, 4294967295, %v3987_v24  ;;  %vm2528_vm5 = vmand %vm1492_vm13, %vm868_vm9  ;;  %vm1493_vm9 = vcmp.lt.f32.partialorder %v2337_v35, 1225.0 }
 0x239   : > { %3989 = vst [vmem:[#allocation6_spill] sm:$0xff] %v3988_v24  ;;  %vm853_vm15 = vmor %vm834_vm12, %vm2402_vm1  ;;  %vm835_vm12 = vcmp.eq.s32.totalorder %v803_v60, 1  ;;  %v2654_v60 = vpop.f32.mrf.mxu2  ;;  %v4085_v24 = vmov 0 }
 0x23a   : > { %vm869_vm3 = vmxor %vm853_vm15, %vm3854_vm4 }
 0x23b   : > { %vm2536_vm10 = vmand %vm1111_vm11, %vm869_vm3 }
 0x23c   : > { %v3994_v25 = vsel %vm2536_vm10, 4294967295, %v3993_v25  ;;  %vm2541_vm6 = vmand %vm1355_vm2, %vm869_vm3  ;;  %vm1112_vm2 = vcmp.lt.f32.partialorder %v2357_v17, 625.0 }
 0x23d   : > { %1794 = vset.pattern.permute.xlu2 %v1841_v29  ;;  %v3990_v29 = vmov 0  ;;  %v3996_v50 = vsel %vm2541_vm6, 4294967295, %v3995_v50  ;;  %vm2551_vm13 = vmand %vm1493_vm9, %vm869_vm3  ;;  %vm1356_vm3 = vcmp.lt.f32.partialorder %v2357_v17, 900.0  ;;  %vm836_vm9 = vcmp.eq.s32.totalorder %v806_v3, 1 }
 0x23e   : > { %1010 = vperm.xlu2 %1794, %v2203_v18   ;;  %v809_v16 = vpop.permute.xlu2 %808  ;;  %v3991_v29 = vsel %vm2528_vm5, 4294967295, %v3990_v29  ;;  %v3998_v19 = vsel %vm2551_vm13, 4294967295, %v3997_v19  ;;  %vm854_vm15 = vmor %vm835_vm12, %vm2402_vm1  ;;  %vm1494_vm12 = vcmp.lt.f32.partialorder %v2357_v17, 1225.0  ;;  %v4008_v17 = vmov 0 }
 0x23f   : > { %3992 = vst [vmem:[#allocation7_spill] sm:$0xff] %v3991_v29  ;;  %vm870_vm11 = vmxor %vm854_vm15, %vm3854_vm4  ;;  %v1015_v36 = vpop.permute.xlu1 %1014 }
 0x240   : > { %v812_v18 = vpop.permute.xlu0 %811  ;;  %vm2562_vm5 = vmand %vm1112_vm2, %vm870_vm11  ;;  %vm1113_vm2 = vcmp.lt.f32.partialorder %v2359_v26, 625.0  ;;  %v1074_v48 = vsub.f32 %v2616_v41, %v1015_v36 }
 0x241   : > { %vm2569_vm13 = vmand %vm1356_vm3, %vm870_vm11 }
 0x242   : > { %v4003_v20 = vsel %vm2569_vm13, 4294967295, %v4002_v20  ;;  %vm2574_vm6 = vmand %vm1494_vm12, %vm870_vm11  ;;  %vm1357_vm11 = vcmp.lt.f32.partialorder %v2359_v26, 900.0  ;;  %vm837_vm12 = vcmp.eq.s32.totalorder %v809_v16, 1  ;;  %v4033_v16 = vmov 0 }
 0x243   : > { %4004 = vst [vmem:[#allocation9_spill] sm:$0xff] %v4003_v20  ;;  %v4006_v15 = vsel %vm2574_vm6, 4294967295, %v4005_v15  ;;  %vm855_vm15 = vmor %vm836_vm9, %vm2402_vm1  ;;  %vm1495_vm6 = vcmp.lt.f32.partialorder %v2359_v26, 1225.0  ;;  %v4019_v26 = vmov 0  ;;  %v4113_v20 = vmov 0 }
 0x244   : > { %4007 = vst [vmem:[#allocation10_spill] sm:$0xff] %v4006_v15 }
 0x246   : > { %1022 = vperm.xlu2 %1794, %v2214_v51   ;;  %v2546_v52 = vpop.permute.xlu2 %814  ;;  %v3999_v51 = vmov 0 }
 0x247   : > { %v4000_v51 = vsel %vm2562_vm5, 4294967295, %v3999_v51  ;;  %vm871_vm5 = vmxor %vm855_vm15, %vm3854_vm4  ;;  %v2629_v63 = vpop.permute.xlu1 %1026 }
 0x248   : > { %4001 = vst [vmem:[#allocation8_spill] sm:$0xff] %v4000_v51  ;;  %v2567_v35 = vpop.permute.xlu0 %817  ;;  %vm2586_vm3 = vmand %vm1113_vm2, %vm871_vm5  ;;  %vm1114_vm2 = vcmp.lt.f32.partialorder %v740_v23, 625.0 }
 0x249   : > { %v4009_v17 = vsel %vm2586_vm3, 4294967295, %v4008_v17  ;;  %vm2591_vm13 = vmand %vm1357_vm11, %vm871_vm5  ;;  %vm1496_vm11 = vcmp.lt.f32.partialorder %v740_v23, 1225.0 }
 0x24a   : > { %4010 = vst [vmem:[#allocation11_spill] sm:$0xff] %v4009_v17  ;;  %vm2595_vm9 = vmand %vm1495_vm6, %vm871_vm5  ;;  %vm1358_vm6 = vcmp.lt.f32.partialorder %v740_v23, 900.0  ;;  %v3859_v23 = vmov 0.0   ;;  %v4077_v17 = vmov 0 }
 0x24b   : > { %v4015_v8 = vsel %vm2595_vm9, 4294967295, %v4014_v8  ;;  %vm856_vm15 = vmor %vm837_vm12, %vm2402_vm1  ;;  %vm838_vm12 = vcmp.eq.s32.totalorder %v812_v18, 1  ;;  %v4035_v18 = vmov 0 }
 0x24c   : > { %4016 = vst [vmem:[#allocation13_spill] sm:$0xff] %v4015_v8  ;;  %vm2602_vm10 = vmxor %vm856_vm15, %vm3854_vm4 }
 0x24d   : > { %vm2608_vm3 = vmand %vm1114_vm2, %vm2602_vm10 }
 0x24e   : > { %1030 = vperm.xlu2 %1794, %v2220_v0   ;;  %v2583_v22 = vpop.permute.xlu2 %820  ;;  %v4011_v0 = vmov 0  ;;  %v4020_v26 = vsel %vm2608_vm3, 4294967295, %v4019_v26  ;;  %vm2620_vm5 = vmand %vm1358_vm6, %vm2602_vm10  ;;  %vm1115_vm6 = vcmp.lt.f32.partialorder %v2392_v27, 625.0 }
 0x24f   : > { %v4012_v0 = vsel %vm2591_vm13, 4294967295, %v4011_v0  ;;  %v4022_v32 = vsel %vm2620_vm5, 4294967295, %v4021_v32  ;;  %vm2633_vm15 = vmand %vm1496_vm11, %vm2602_vm10  ;;  %vm1090_vm13 = vcmp.eq.f32.partialorder %v1074_v48, 0.0  ;;  %vm1359_vm5 = vcmp.lt.f32.partialorder %v2392_v27, 900.0  ;;  %v2708_v1 = vpop.permute.xlu1 %1034 }
 0x250   : > { %4013 = vst [vmem:[#allocation12_spill] sm:$0xff] %v4012_v0  ;;  %v2612_v49 = vpop.permute.xlu0 %823  ;;  %vm857_vm2 = vmor %vm838_vm12, %vm2402_vm1  ;;  %vm839_vm11 = vcmp.eq.s32.totalorder %v2546_v52, 1  ;;  %vm1228_vm12 = vcmp.eq.f32.partialorder %v1074_v48, 1.0  ;;  %v4039_v52 = vmov 0  ;;  %v4068_v0 = vmov 0 }
 0x251   : > { %vm2641_vm9 = vmxor %vm857_vm2, %vm3854_vm4  ;;  %vm1334_vm2 = vcmp.eq.f32.partialorder %v1074_v48, 2.0  ;;  %vm1472_vm4 = vcmp.eq.f32.partialorder %v1074_v48, 3.0  ;;  %v1079_v29 = vsub.f32 %v2616_v41, %v2708_v1 }
 0x252   : > { %vm2649_vm10 = vmand %vm1115_vm6, %vm2641_vm9 }
 0x253   : > { %v4028_v21 = vsel %vm2649_vm10, 4294967295, %v4027_v21  ;;  %vm2659_vm3 = vmand %vm1359_vm5, %vm2641_vm9 }
 0x254   : > { %4029 = vst [vmem:[#allocation14_spill] sm:$0xff] %v4028_v21  ;;  %vm2667_vm6 = vmand %vm1090_vm13, %vm2455_vm14 }
 0x255   : > { %v4034_v16 = vsel %vm2667_vm6, 4294967295, %v4033_v16  ;;  %vm2673_vm10 = vmand %vm1228_vm12, %vm2455_vm14 }
 0x256   : > { %1042 = vperm.xlu2 %1794, %v2229_v55   ;;  %v2624_v34 = vpop.permute.xlu2 %826  ;;  %v4023_v55 = vmov 0  ;;  %v4036_v18 = vsel %vm2673_vm10, 4294967295, %v4035_v18  ;;  %vm2679_vm5 = vmand %vm1334_vm2, %vm2461_vm0  ;;  %vm4044_vm0 = vmmov 1   ;;  %vm1116_vm2 = vcmp.lt.f32.partialorder %v2372_v10, 625.0 }
 0x257   : > { %v4024_v55 = vsel %vm2633_vm15, 4294967295, %v4023_v55  ;;  %vm1497_vm15 = vcmp.lt.f32.partialorder %v2392_v27, 1225.0  ;;  %v4037_v27 = vmov 0  ;;  %vm858_vm14 = vmor %vm839_vm11, %vm2402_vm1  ;;  %vm1498_vm11 = vcmp.lt.f32.partialorder %v2372_v10, 1225.0 }
 0x258   : > { %v4038_v27 = vsel %vm2679_vm5, 4294967295, %v4037_v27  ;;  %vm2691_vm13 = vmand %vm1497_vm15, %vm2641_vm9  ;;  %vm840_vm9 = vcmp.eq.s32.totalorder %v2567_v35, 1  ;;  %v4065_v35 = vmov 0 }
 0x259   : > { %v2663_v3 = vpop.permute.xlu0 %880  ;;  %v4042_v59 = vsel %vm2691_vm13, 4294967295, %v4041_v59  ;;  %vm874_vm12 = vmxor %vm858_vm14, %vm4044_vm0 }
 0x25a   : > { %4043 = vst [vmem:[#allocation16_spill] sm:$0xff] %v4042_v59  ;;  %vm2716_vm14 = vmand %vm1498_vm11, %vm874_vm12  ;;  %vm1499_vm11 = vcmp.lt.f32.partialorder %v2399_v38, 1225.0 }
 0x25b   : > { %v4052_v9 = vsel %vm2716_vm14, 4294967295, %v4051_v9 }
 0x25c   : > { %4053 = vst [vmem:[#allocation19_spill] sm:$0xff] %v4052_v9 }
 0x25e   : > { %1054 = vperm.xlu2 %1794, %v2243_v11   ;;  %v4030_v11 = vmov 0 }
 0x25f   : > { %v4031_v11 = vsel %vm2659_vm3, 4294967295, %v4030_v11  ;;  %vm2685_vm3 = vmand %vm1472_vm4, %vm2466_vm8  ;;  %v885_v44 = vpop.permute.xlu2 %884  ;;  %vm1360_vm8 = vcmp.lt.f32.partialorder %v2372_v10, 900.0 }
 0x260   : > { %4032 = vst [vmem:[#allocation15_spill] sm:$0xff] %v4031_v11  ;;  %v4040_v52 = vsel %vm2685_vm3, 4294967295, %v4039_v52  ;;  %vm2701_vm4 = vmand %vm1116_vm2, %vm874_vm12  ;;  %vm945_vm15 = vcmp.eq.f32.partialorder %v885_v44, %v2695_v58  ;;  %v2741_v44 = vpop.f32.mrf.mxu2  ;;  %vm843_vm3 = vcmp.eq.s32.totalorder %v2624_v34, 1 }
 0x261   : > { %v4046_v30 = vsel %vm2701_vm4, 4294967295, %v4045_v30  ;;  %vm2710_vm13 = vmand %vm1360_vm8, %vm874_vm12  ;;  %v961_v36 = vsel %vm945_vm15, 1.0, %v3859_v23  ;;  %vm1117_vm8 = vcmp.lt.f32.partialorder %v2399_v38, 625.0  ;;  %v2731_v48 = vpop.permute.xlu0 %892  ;;  %v1047_v23 = vpop.permute.xlu1 %1046 }
 0x262   : > { %4047 = vst [vmem:[#allocation17_spill] sm:$0xff] %v4046_v30  ;;  %v4049_v37 = vsel %vm2710_vm13, 4294967295, %v4048_v37  ;;  %v977_v39 = vsub.f32 %v451_v5, %v961_v36  ;;  %vm859_vm2 = vmor %vm840_vm9, %vm2402_vm1  ;;  %vm1361_vm9 = vcmp.lt.f32.partialorder %v2399_v38, 900.0  ;;  %v4058_v5 = vmov 0 }
 0x263   : > { %4050 = vst [vmem:[#allocation18_spill] sm:$0xff] %v4049_v37  ;;  %vm2725_vm4 = vmxor %vm859_vm2, %vm4044_vm0  ;;  %vm841_vm2 = vcmp.eq.s32.totalorder %v2583_v22, 1  ;;  %vm1118_vm13 = vcmp.lt.f32.partialorder %v2379_v12, 625.0  ;;  %v4062_v38 = vmov 0  ;;  %v2784_v22 = vpop.f32.mrf.mxu1  ;;  %v2858_v62 = vsub.f32 %v2616_v41, %v1047_v23  ;;  %v2878_v23 = vpop.f32.mrf.mxu0 }
 0x264   : > { %v2729_v10 = vmul.f32 %v977_v39, %v977_v39  ;;  %vm2735_vm12 = vmand %vm1117_vm8, %vm2725_vm4  ;;  %v4060_v39 = vmov 0 }
 0x265   : > { %v4057_v46 = vsel %vm2735_vm12, 4294967295, %v4056_v46  ;;  %vm2760_vm15 = vmand %vm1361_vm9, %vm2725_vm4  ;;  %vm1362_vm12 = vcmp.lt.f32.partialorder %v2379_v12, 900.0 }
 0x266   : > { %1066 = vperm.xlu2 %1794, %v2259_v33   ;;  %v2739_v33 = vpop.f32.mrf.mxu3  ;;  %v4059_v5 = vsel %vm2760_vm15, 4294967295, %v4058_v5  ;;  %vm2768_vm8 = vmand %vm1499_vm11, %vm2725_vm4  ;;  %vm842_vm4 = vcmp.eq.s32.totalorder %v2612_v49, 1  ;;  %v4074_v49 = vmov 0 }
 0x267   : > { %v2756_v9 = vpop.permute.xlu2 %888  ;;  %v4061_v39 = vsel %vm2768_vm8, 4294967295, %v4060_v39  ;;  %vm860_vm14 = vmor %vm841_vm2, %vm2402_vm1  ;;  %vm1500_vm2 = vcmp.lt.f32.partialorder %v2379_v12, 1225.0  ;;  %v4071_v12 = vmov 0 }
 0x268   : > { %vm876_vm9 = vmxor %vm860_vm14, %vm4044_vm0  ;;  %v2795_v8 = vpop.f32.mrf.mxu2 }
 0x269   : > { %v2774_v36 = vpop.permute.xlu0 %900  ;;  %vm2778_vm15 = vmand %vm1118_vm13, %vm876_vm9 }
 0x26a   : > { %v4063_v38 = vsel %vm2778_vm15, 4294967295, %v4062_v38  ;;  %vm2786_vm11 = vmand %vm1362_vm12, %vm876_vm9  ;;  %vm1119_vm12 = vcmp.lt.f32.partialorder %v2427_v45, 625.0 }
 0x26b   : > { %4064 = vst [vmem:[#allocation20_spill] sm:$0xff] %v4063_v38  ;;  %v4066_v35 = vsel %vm2786_vm11, 4294967295, %v4065_v35  ;;  %vm2797_vm13 = vmand %vm1500_vm2, %vm876_vm9  ;;  %vm1363_vm11 = vcmp.lt.f32.partialorder %v2427_v45, 900.0  ;;  %vm1501_vm9 = vcmp.lt.f32.partialorder %v2427_v45, 1225.0  ;;  %v1077_v45 = vsub.f32 %v2616_v41, %v2629_v63  ;;  %v2846_v63 = vpop.f32.mrf.mxu1 }
 0x26c   : > { %4067 = vst [vmem:[#allocation21_spill] sm:$0xff] %v4066_v35  ;;  %v4069_v0 = vsel %vm2797_vm13, 4294967295, %v4068_v0  ;;  %vm861_vm14 = vmor %vm842_vm4, %vm2402_vm1  ;;  %vm955_vm4 = vcmp.eq.f32.partialorder %v2521_v54, %v2695_v58  ;;  %v1059_v35 = vpop.permute.xlu1 %1058  ;;  %vm1233_vm13 = vcmp.eq.f32.partialorder %v1079_v29, 1.0 }
 0x26d   : > { %4070 = vst [vmem:[#allocation22_spill] sm:$0xff] %v4069_v0  ;;  %vm877_vm15 = vmxor %vm861_vm14, %vm4044_vm0  ;;  %vm958_vm14 = vcmp.eq.f32.partialorder %v2548_v4, %v2695_v58  ;;  %v4082_v4 = vmov 0.0   ;;  %v2870_v1 = vsub.f32 %v2616_v41, %v1059_v35 }
 0x26e   : > { %v2793_v30 = vpop.f32.mrf.mxu3  ;;  %vm2806_vm8 = vmand %vm1119_vm12, %vm877_vm15 }
 0x26f   : > { %v2791_v37 = vpop.permute.xlu2 %896  ;;  %v4072_v12 = vsel %vm2806_vm8, 4294967295, %v4071_v12  ;;  %vm2812_vm2 = vmand %vm1363_vm11, %vm877_vm15 }
 0x270   : > { %4073 = vst [vmem:[#allocation23_spill] sm:$0xff] %v4072_v12  ;;  %v4075_v49 = vsel %vm2812_vm2, 4294967295, %v4074_v49  ;;  %vm2822_vm12 = vmand %vm1501_vm9, %vm877_vm15  ;;  %vm1120_vm2 = vcmp.lt.f32.partialorder %v2384_v56, 625.0  ;;  %v476_v38 = vpop.f32.mrf.mxu2  ;;  %vm1502_vm9 = vcmp.lt.f32.partialorder %v2384_v56, 1225.0 }
 0x271   : > { %4076 = vst [vmem:[#allocation24_spill] sm:$0xff] %v4075_v49  ;;  %v2816_v0 = vpop.permute.xlu0 %908  ;;  %v4078_v17 = vsel %vm2822_vm12, 4294967295, %v4077_v17  ;;  %vm862_vm8 = vmor %vm843_vm3, %vm2402_vm1  ;;  %v971_v49 = vsel %vm955_vm4, 1.0, %v4082_v4  ;;  %vm1364_vm3 = vcmp.lt.f32.partialorder %v2384_v56, 900.0  ;;  %vm1095_vm12 = vcmp.eq.f32.partialorder %v1079_v29, 0.0 }
 0x272   : > { %4079 = vst [vmem:[#allocation25_spill] sm:$0xff] %v4078_v17  ;;  %vm2831_vm11 = vmxor %vm862_vm8, %vm4044_vm0  ;;  %v974_v17 = vsel %vm958_vm14, 1.0, %v4082_v4  ;;  %v987_v59 = vsub.f32 %v476_v38, %v971_v49  ;;  %vm1093_vm0 = vcmp.eq.f32.partialorder %v1077_v45, 0.0  ;;  %v4089_v38 = vmov 0 }
 0x273   : > { %vm2842_vm1 = vmand %vm1120_vm2, %vm2831_vm11  ;;  %vm1231_vm2 = vcmp.eq.f32.partialorder %v1077_v45, 1.0  ;;  %vm1337_vm14 = vcmp.eq.f32.partialorder %v1077_v45, 2.0 }
 0x274   : > { %v4084_v40 = vsel %vm2842_vm1, 4294967295, %v4083_v40  ;;  %vm2853_vm15 = vmand %vm1364_vm3, %vm2831_vm11  ;;  %v2886_v56 = vmul.f32 %v987_v59, %v987_v59  ;;  %v1071_v49 = vpop.permute.xlu1 %1070  ;;  %v2931_v59 = vsel %vm2667_vm6, 1.0, %v4082_v4  ;;  %vm4136_vm6 = vcmp.eq.f32.partialorder %v2731_v48, %v2695_v58 }
 0x275   : > { %v4086_v24 = vsel %vm2853_vm15, 4294967295, %v4085_v24  ;;  %vm2862_vm8 = vmand %vm1093_vm0, %vm2494_vm7  ;;  %vm1475_vm0 = vcmp.eq.f32.partialorder %v1077_v45, 3.0  ;;  %v4107_v45 = vmov 0 }
 0x276   : > { %v484_v12 = vpop.f32.mrf.mxu3  ;;  %vm2874_vm4 = vmand %vm1502_vm9, %vm2831_vm11  ;;  %4093 = vst [vmem:[#allocation26_spill] sm:$0xff] %v2886_v56  ;;  %vm4095_vm11 = vnez %v3981_v7  ;;  %v2961_v56 = vsel %vm2862_vm8, 1.0, %v4082_v4 }
 0x277   : > { %v2836_v54 = vpop.permute.xlu2 %904  ;;  %v990_v11 = vsub.f32 %v484_v12, %v974_v17  ;;  %v4090_v38 = vsel %vm2874_vm4, 4294967295, %v4089_v38  ;;  %vm2882_vm3 = vmand %vm1231_vm2, %vm2494_vm7  ;;  %v4091_v12 = vmov 0  ;;  %vm4098_vm7 = vnez %v3983_v61  ;;  %4110 = vst [vmem:[#allocation28_spill] sm:$0xff] %v2961_v56 }
 0x278   : > { %v4092_v12 = vsel %vm2882_vm3, 4294967295, %v4091_v12  ;;  %vm2892_vm9 = vmand %vm1337_vm14, %vm4095_vm11  ;;  %vm1339_vm4 = vcmp.eq.f32.partialorder %v1079_v29, 2.0  ;;  %vm4101_vm3 = vnez %v3994_v25  ;;  %v2916_v61 = vsub.f32 %v2616_v41, %v1071_v49  ;;  %v464_v49 = vpop.f32.mrf.mxu1 }
 0x279   : > { %v2867_v17 = vpop.permute.xlu0 %916  ;;  %v2888_v35 = vmul.f32 %v990_v11, %v990_v11  ;;  %vm2900_vm2 = vmand %vm1475_vm0, %vm4098_vm7  ;;  %v4104_v11 = vmov 0  ;;  %v2936_v25 = vsel %vm2673_vm10, 1.0, %v4082_v4  ;;  %vm4109_vm7 = vnez %v4040_v52 }
 0x27a   : > { %v4100_v14 = vsel %vm2900_vm2, 4294967295, %v4099_v14  ;;  %vm2907_vm14 = vmand %vm1095_vm12, %vm4101_vm3  ;;  %vm4115_vm12 = vnez %v4092_v12  ;;  %vm4128_vm10 = vcmp.eq.f32.partialorder %v2663_v3, %v2695_v58  ;;  %vm4155_vm0 = vnez %v4059_v5 }
 0x27b   : > { %4094 = vst [vmem:[#allocation27_spill] sm:$0xff] %v2888_v35  ;;  %vm2920_vm1 = vmand %vm1233_vm13, %vm4101_vm3  ;;  %vm4106_vm13 = vnez %v3996_v50  ;;  %v2951_v35 = vsel %vm2679_vm5, 1.0, %v4082_v4  ;;  %v2956_v50 = vsel %vm4109_vm7, 1.0, %v4082_v4  ;;  %v2975_v2 = vsel %vm4115_vm12, 1.0, %v4082_v4 }
 0x27c   : > { %v4105_v11 = vsel %vm2920_vm1, 4294967295, %v4104_v11  ;;  %vm2941_vm3 = vmand %vm1339_vm4, %vm4106_vm13  ;;  %vm4111_vm4 = vnez %v3998_v19  ;;  %vm4112_vm13 = vcmp.eq.f32.partialorder %v1079_v29, 3.0  ;;  %4116 = vst [vmem:[#allocation29_spill] sm:$0xff] %v2975_v2  ;;  %v4121_v29 = vmov 0 }
 0x27d   : > { %v4108_v45 = vsel %vm2941_vm3, 4294967295, %v4107_v45  ;;  %vm2966_vm15 = vmand %vm4112_vm13, %vm4111_vm4  ;;  %vm4120_vm4 = vcmp.eq.f32.partialorder %v2858_v62, 0.0  ;;  %vm4123_vm7 = vcmp.eq.f32.partialorder %v2791_v37, %v2695_v58  ;;  %v4126_v2 = vmov 0 }
 0x27e   : > { %v4114_v20 = vsel %vm2966_vm15, 4294967295, %v4113_v20  ;;  %vm4117_vm11 = vmmov %vm2892_vm9  ;;  %vm4119_vm9 = vnez %v4020_v26  ;;  %v964_v19 = vsel %vm4123_vm7, 1.0, %v4082_v4  ;;  %v960_v37 = vsel %vm4128_vm10, 1.0, %v4082_v4 }
 0x27f   : > { %v2896_v15 = vpop.permute.xlu2 %912  ;;  %v2980_v56 = vsel %vm4117_vm11, 1.0, %v4082_v4  ;;  %vm2986_vm13 = vmand %vm4120_vm4, %vm4119_vm9  ;;  %vm4125_vm4 = vcmp.eq.f32.partialorder %v2858_v62, 1.0  ;;  %v3021_v26 = vsel %vm2907_vm14, 1.0, %v4082_v4  ;;  %v3031_v3 = vsel %vm2941_vm3, 1.0, %v4082_v4 }
 0x280   : > { %4118 = vst [vmem:[#allocation30_spill] sm:$0xff] %v2980_v56  ;;  %v4122_v29 = vsel %vm2986_vm13, 4294967295, %v4121_v29  ;;  %v2999_v56 = vsel %vm2900_vm2, 1.0, %v4082_v4  ;;  %vm3005_vm5 = vmand %vm4125_vm4, %vm4119_vm9  ;;  %vm4132_vm10 = vnez %v4022_v32  ;;  %vm4133_vm9 = vcmp.eq.f32.partialorder %v2858_v62, 2.0 }
 0x281   : > { %v929_v42 = vpop.permute.xlu0 %928  ;;  %4124 = vst [vmem:[#allocation31_spill] sm:$0xff] %v2999_v56  ;;  %v4127_v2 = vsel %vm3005_vm5, 4294967295, %v4126_v2  ;;  %v3026_v56 = vsel %vm2920_vm1, 1.0, %v4082_v4  ;;  %vm3037_vm4 = vmand %vm4133_vm9, %vm4132_vm10  ;;  %vm4138_vm7 = vnez %v4024_v55  ;;  %vm4139_vm10 = vcmp.eq.f32.partialorder %v2858_v62, 3.0 }
 0x282   : > { %4129 = vst [vmem:[#allocation32_spill] sm:$0xff] %v3021_v26  ;;  %v4135_v31 = vsel %vm3037_vm4, 4294967295, %v4134_v31  ;;  %vm3057_vm9 = vmand %vm4139_vm10, %vm4138_vm7  ;;  %v4140_v32 = vmov 0  ;;  %v980_v51 = vsub.f32 %v2784_v22, %v964_v19  ;;  %vm4143_vm3 = vnez %v4057_v46 }
 0x283   : > { %4130 = vst [vmem:[#allocation33_spill] sm:$0xff] %v3026_v56  ;;  %v963_v56 = vsel %vm4136_vm6, 1.0, %v4082_v4  ;;  %v4141_v32 = vsel %vm3057_vm9, 4294967295, %v4140_v32  ;;  %vm4142_vm6 = vcmp.eq.f32.partialorder %v2756_v9, %v2695_v58  ;;  %vm4144_vm7 = vcmp.eq.f32.partialorder %v2870_v1, 0.0 }
 0x284   : > { %4131 = vst [vmem:[#allocation34_spill] sm:$0xff] %v3031_v3  ;;  %v3051_v3 = vsel %vm2966_vm15, 1.0, %v4082_v4  ;;  %v962_v48 = vsel %vm4142_vm6, 1.0, %v4082_v4  ;;  %vm3073_vm10 = vmand %vm4144_vm7, %vm4143_vm3  ;;  %v4145_v62 = vmov 0  ;;  %v976_v55 = vsub.f32 %v2626_v47, %v960_v37 }
 0x285   : > { %4137 = vst [vmem:[#allocation35_spill] sm:$0xff] %v3051_v3  ;;  %v456_v3 = vpop.f32.mrf.mxu0  ;;  %v4146_v62 = vsel %vm3073_vm10, 4294967295, %v4145_v62  ;;  %vm4147_vm6 = vcmp.eq.f32.partialorder %v2774_v36, %v2695_v58  ;;  %vm4148_vm15 = vcmp.eq.f32.partialorder %v2836_v54, %v2695_v58  ;;  %v3091_v19 = vsel %vm2986_vm13, 1.0, %v4082_v4 }
 0x286   : > { %v965_v9 = vsel %vm4147_vm6, 1.0, %v4082_v4  ;;  %v966_v22 = vsel %vm4148_vm15, 1.0, %v4082_v4  ;;  %v3096_v47 = vsel %vm3005_vm5, 1.0, %v4082_v4  ;;  %v3101_v36 = vsel %vm3037_vm4, 1.0, %v4082_v4 }
 0x287   : > { %v3046_v26 = vpop.permute.xlu2 %920  ;;  %4149 = vst [vmem:[#allocation36_spill] sm:$0xff] %v3096_v47  ;;  %vm4151_vm7 = vcmp.eq.f32.partialorder %v2870_v1, 1.0  ;;  %v4152_v54 = vmov 0  ;;  %v979_v37 = vsub.f32 %v456_v3, %v963_v56  ;;  %v3115_v47 = vsel %vm3057_vm9, 1.0, %v4082_v4 }
 0x288   : > { %4150 = vst [vmem:[#allocation37_spill] sm:$0xff] %v3101_v36  ;;  %vm3107_vm15 = vmand %vm4151_vm7, %vm4143_vm3  ;;  %vm4156_vm4 = vcmp.eq.f32.partialorder %v2870_v1, 2.0  ;;  %v4157_v46 = vmov 0  ;;  %v978_v36 = vsub.f32 %v2878_v23, %v962_v48  ;;  %vm4159_vm3 = vcmp.eq.f32.partialorder %v2867_v17, %v2695_v58 }
 0x289   : > { %v4153_v54 = vsel %vm3107_vm15, 4294967295, %v4152_v54  ;;  %4154 = vst [vmem:[#allocation38_spill] sm:$0xff] %v3115_v47  ;;  %vm3121_vm5 = vmand %vm4156_vm4, %vm4155_vm0  ;;  %v969_v56 = vsel %vm4159_vm3, 1.0, %v4082_v4  ;;  %vm956_vm7 = vcmp.eq.f32.partialorder %v929_v42, %v2695_v58  ;;  %vm4160_vm6 = vnez %v4061_v39  ;;  %v941_v48 = vpop.permute.xlu0 %940 }
 0x28a   : > { %v4158_v46 = vsel %vm3121_vm5, 4294967295, %v4157_v46  ;;  %vm4161_vm9 = vcmp.eq.f32.partialorder %v2870_v1, 3.0  ;;  %v4162_v5 = vmov 0  ;;  %v981_v3 = vsub.f32 %v2846_v63, %v965_v9  ;;  %v4278_v7 = vld [vmem:[#allocation33_spill] sm:$0xff] }
 0x28b   : > { %vm3135_vm13 = vmand %vm4161_vm9, %vm4160_vm6  ;;  %v3140_v47 = vmul.f32 %v980_v51, %v980_v51  ;;  %vm4164_vm0 = vcmp.eq.f32.partialorder %v2816_v0, %v2695_v58  ;;  %v982_v23 = vsub.f32 %v464_v49, %v966_v22  ;;  %v3149_v42 = vsel %vm3073_vm10, 1.0, %v4082_v4  ;;  %v466_v51 = vpop.f32.mrf.mxu1 }
 0x28c   : > { %v4163_v5 = vsel %vm3135_vm13, 4294967295, %v4162_v5  ;;  %v967_v17 = vsel %vm4164_vm0, 1.0, %v4082_v4  ;;  %v3154_v39 = vsel %vm3107_vm15, 1.0, %v4082_v4  ;;  %v3156_v63 = vmul.f32 %v976_v55, %v976_v55 }
 0x28d   : > { %4165 = vst [vmem:[#allocation39_spill] sm:$0xff] %v3154_v39  ;;  %v3162_v0 = vsel %vm3121_vm5, 1.0, %v4082_v4  ;;  %v3164_v1 = vmul.f32 %v979_v37, %v979_v37  ;;  %v985_v49 = vsub.f32 %v2741_v44, %v969_v56  ;;  %v972_v9 = vsel %vm956_vm7, 1.0, %v4082_v4 }
 0x28e   : > { %4166 = vst [vmem:[#allocation40_spill] sm:$0xff] %v3162_v0  ;;  %v3171_v22 = vsel %vm3135_vm13, 1.0, %v4082_v4  ;;  %vm4168_vm9 = vnez %v4084_v40  ;;  %vm4169_vm6 = vcmp.eq.f32.partialorder %v2916_v61, 0.0  ;;  %v4170_v55 = vmov 0 }
 0x28f   : > { %4167 = vst [vmem:[#allocation41_spill] sm:$0xff] %v3171_v22  ;;  %vm3177_vm3 = vmand %vm4169_vm6, %vm4168_vm9  ;;  %v3181_v0 = vmul.f32 %v978_v36, %v978_v36  ;;  %v983_v37 = vsub.f32 %v466_v51, %v967_v17  ;;  %vm952_vm0 = vcmp.eq.f32.partialorder %v2896_v15, %v2695_v58  ;;  %v933_v44 = vpop.permute.xlu2 %932  ;;  %vm4172_vm7 = vcmp.eq.f32.partialorder %v2916_v61, 1.0 }
 0x290   : > { %v4171_v55 = vsel %vm3177_vm3, 4294967295, %v4170_v55  ;;  %vm3189_vm4 = vmand %vm4172_vm7, %vm4168_vm9  ;;  %v4173_v56 = vmov 0  ;;  %v3193_v22 = vmul.f32 %v981_v3, %v981_v3  ;;  %v3198_v39 = vmul.f32 %v982_v23, %v982_v23 }
 0x291   : > { %v4174_v56 = vsel %vm3189_vm4, 4294967295, %v4173_v56  ;;  %vm4176_vm6 = vcmp.eq.f32.partialorder %v941_v48, %v2695_v58  ;;  %vm4177_vm13 = vnez %v4086_v24  ;;  %vm4178_vm5 = vcmp.eq.f32.partialorder %v2916_v61, 2.0  ;;  %v486_v24 = vpop.f32.mrf.mxu3 }
 0x292   : > { %4175 = vst [vmem:[#allocation42_spill] sm:$0xff] %v4174_v56  ;;  %v975_v15 = vsel %vm4176_vm6, 1.0, %v4082_v4  ;;  %vm3207_vm9 = vmand %vm4178_vm5, %vm4177_vm13  ;;  %v4179_v40 = vmov 0  ;;  %v988_v23 = vsub.f32 %v2739_v33, %v972_v9  ;;  %vm954_vm7 = vcmp.eq.f32.partialorder %v3046_v26, %v2695_v58  ;;  %v1019_v48 = vpop.permute.xlu0 %1018 }
 0x293   : > { %v4180_v40 = vsel %vm3207_vm9, 4294967295, %v4179_v40  ;;  %v3223_v51 = vmul.f32 %v985_v49, %v985_v49  ;;  %v968_v36 = vsel %vm952_vm0, 1.0, %v4082_v4  ;;  %vm957_vm5 = vcmp.eq.f32.partialorder %v933_v44, %v2695_v58 }
 0x294   : > { %4181 = vst [vmem:[#allocation43_spill] sm:$0xff] %v4180_v40  ;;  %v3230_v17 = vsel %vm3177_vm3, 1.0, %v4082_v4  ;;  %v3235_v33 = vsel %vm3189_vm4, 1.0, %v4082_v4  ;;  %vm4183_vm13 = vnez %v4090_v38  ;;  %vm4184_vm6 = vcmp.eq.f32.partialorder %v2916_v61, 3.0 }
 0x295   : > { %4182 = vst [vmem:[#allocation44_spill] sm:$0xff] %v3235_v33  ;;  %vm3241_vm2 = vmand %vm4184_vm6, %vm4183_vm13  ;;  %v4185_v26 = vmov 0  ;;  %v3245_v49 = vmul.f32 %v983_v37, %v983_v37  ;;  %v991_v58 = vsub.f32 %v486_v24, %v975_v15  ;;  %v3250_v9 = vsel %vm3207_vm9, 1.0, %v4082_v4 }
 0x296   : > { %v4186_v26 = vsel %vm3241_vm2, 4294967295, %v4185_v26  ;;  %4187 = vst [vmem:[#allocation45_spill] sm:$0xff] %v3250_v9  ;;  %v970_v61 = vsel %vm954_vm7, 1.0, %v4082_v4  ;;  %v984_v37 = vsub.f32 %v2654_v60, %v968_v36  ;;  %v3260_v3 = vmul.f32 %v988_v23, %v988_v23 }
 0x297   : > { %v973_v15 = vsel %vm957_vm5, 1.0, %v4082_v4  ;;  %v1075_v24 = vsub.f32 %v2616_v41, %v1019_v48  ;;  %v3267_v9 = vsel %vm3241_vm2, 1.0, %v4082_v4  ;;  %v986_v23 = vsub.f32 %v2795_v8, %v970_v61 }
 0x298   : > { %4188 = vst [vmem:[#allocation46_spill] sm:$0xff] %v3267_v9  ;;  %v3282_v48 = vmul.f32 %v991_v58, %v991_v58  ;;  %v1011_v9 = vpop.permute.xlu2 %1010  ;;  %v989_v44 = vsub.f32 %v2793_v30, %v973_v15  ;;  %v3292_v36 = vmul.f32 %v984_v37, %v984_v37  ;;  %vm4197_vm13 = vnez %v3958_v57 }
 0x299   : > { %vm1091_vm6 = vcmp.eq.f32.partialorder %v1075_v24, 0.0  ;;  %vm1229_vm7 = vcmp.eq.f32.partialorder %v1075_v24, 1.0  ;;  %v1073_v33 = vsub.f32 %v2616_v41, %v1011_v9  ;;  %v3312_v37 = vmul.f32 %v986_v23, %v986_v23 }
 0x29a   : > { %vm3308_vm0 = vmand %vm1091_vm6, %vm4197_vm13  ;;  %v3329_v58 = vmul.f32 %v989_v44, %v989_v44  ;;  %vm1335_vm10 = vcmp.eq.f32.partialorder %v1075_v24, 2.0  ;;  %vm4202_vm3 = vnez %v3952_v13  ;;  %v1039_v15 = vpop.permute.xlu0 %1038  ;;  %vm4204_vm6 = vnez %v4034_v16 }
 0x29b   : > { %vm1089_vm1 = vcmp.eq.f32.partialorder %v1073_v33, 0.0  ;;  %vm3322_vm5 = vmand %vm1229_vm7, %vm4197_vm13  ;;  %vm1471_vm15 = vcmp.eq.f32.partialorder %v1073_v33, 3.0  ;;  %vm4203_vm7 = vcmp.eq.f32.partialorder %v1073_v33, 1.0  ;;  %v3339_v8 = vsub.f32 %v2616_v41, %v1039_v15 }
 0x29c   : > { %vm1137_vm2 = vmand %vm1089_vm1, %vm4202_vm3  ;;  %v4205_v44 = vsel %vm4204_vm6, %v2729_v10, 0.0  ;;  %vm4206_vm1 = vnez %v3954_v28  ;;  %vm4210_vm6 = vnez %v3956_v43  ;;  %v1298_v61 = vsel %vm3322_vm5, 1.0, %v4082_v4 }
 0x29d   : > { %v1153_v57 = vsel %vm1137_vm2, %v3156_v63, 0.0  ;;  %v1190_v30 = vsel %vm1137_vm2, 1.0, %v4082_v4  ;;  %vm1243_vm13 = vmand %vm4203_vm7, %vm4202_vm3  ;;  %vm4207_vm2 = vcmp.eq.f32.partialorder %v1073_v33, 2.0  ;;  %vm4208_vm3 = vnez %v4036_v18 }
 0x29e   : > { %v1169_v23 = vadd.f32 %v4205_v44, %v1153_v57  ;;  %v1206_v60 = vadd.f32 %v2931_v59, %v1190_v30  ;;  %v1259_v38 = vsel %vm1243_vm13, %v3156_v63, 0.0  ;;  %v1296_v40 = vsel %vm1243_vm13, 1.0, %v4082_v4  ;;  %vm1381_vm4 = vmand %vm4207_vm2, %vm4206_vm1 }
 0x29f   : > { %v4209_v13 = vsel %vm4208_vm3, %v2729_v10, 0.0  ;;  %v1312_v16 = vadd.f32 %v2936_v25, %v1296_v40  ;;  %v1397_v56 = vsel %vm1381_vm4, %v3156_v63, 0.0  ;;  %v1434_v57 = vsel %vm1381_vm4, 1.0, %v4082_v4  ;;  %vm1519_vm7 = vmand %vm1471_vm15, %vm4210_vm6 }
 0x2a0   : > { %v1275_v15 = vadd.f32 %v4209_v13, %v1259_v38  ;;  %v1023_v59 = vpop.permute.xlu2 %1022  ;;  %vm4211_vm13 = vnez %v3960_v53  ;;  %vm4214_vm2 = vnez %v4038_v27  ;;  %v1450_v40 = vadd.f32 %v2951_v35, %v1434_v57  ;;  %v4222_v57 = vld [vmem:[#allocation8_spill] sm:$0xff] }
 0x2a1   : > { %vm3364_vm1 = vmand %vm1335_vm10, %vm4211_vm13  ;;  %v4215_v18 = vsel %vm4214_vm2, %v2729_v10, 0.0  ;;  %v1535_v38 = vsel %vm1519_vm7, %v3156_v63, 0.0  ;;  %v1572_v43 = vsel %vm1519_vm7, 1.0, %v4082_v4  ;;  %v1155_v53 = vsel %vm3308_vm0, %v3181_v0, 0.0 }
 0x2a2   : > { %v1413_v25 = vadd.f32 %v4215_v18, %v1397_v56  ;;  %v1192_v33 = vsel %vm3308_vm0, 1.0, %v4082_v4  ;;  %vm4216_vm10 = vnez %v3962_v6  ;;  %vm4217_vm15 = vcmp.eq.f32.partialorder %v1075_v24, 3.0 }
 0x2a3   : > { %vm3384_vm4 = vmand %vm4217_vm15, %vm4216_vm10  ;;  %vm4220_vm3 = vnez %v4040_v52  ;;  %v1588_v56 = vadd.f32 %v2956_v50, %v1572_v43  ;;  %v1261_v30 = vsel %vm3322_vm5, %v3181_v0, 0.0  ;;  %vm1096_vm0 = vcmp.eq.f32.partialorder %v3339_v8, 0.0 }
 0x2a4   : > { %v4221_v35 = vsel %vm4220_vm3, %v2729_v10, 0.0  ;;  %v1076_v6 = vsub.f32 %v2616_v41, %v1023_v59  ;;  %v1170_v24 = vadd.f32 %v1169_v23, %v1155_v53  ;;  %v1399_v52 = vsel %vm3364_vm1, %v3181_v0, 0.0  ;;  %v1051_v23 = vpop.permute.xlu0 %1050 }
 0x2a5   : > { %v1551_v63 = vadd.f32 %v4221_v35, %v1535_v38  ;;  %v1207_v10 = vadd.f32 %v1206_v60, %v1192_v33  ;;  %v1276_v44 = vadd.f32 %v1275_v15, %v1261_v30  ;;  %v1436_v50 = vsel %vm3364_vm1, 1.0, %v4082_v4  ;;  %v4228_v30 = vld [vmem:[#allocation3_spill] sm:$0xff] }
 0x2a6   : > { %v1537_v13 = vsel %vm3384_vm4, %v3181_v0, 0.0  ;;  %vm1092_vm6 = vcmp.eq.f32.partialorder %v1076_v6, 0.0  ;;  %vm1230_vm7 = vcmp.eq.f32.partialorder %v1076_v6, 1.0  ;;  %v1574_v9 = vsel %vm3384_vm4, 1.0, %v4082_v4  ;;  %v4226_v0 = vld [vmem:[#allocation2_spill] sm:$0xff] }
 0x2a7   : > { %vm4223_vm5 = vnez %v4222_v57  ;;  %vm1234_vm2 = vcmp.eq.f32.partialorder %v3339_v8, 1.0  ;;  %v1313_v15 = vadd.f32 %v1312_v16, %v1298_v61  ;;  %vm1336_vm1 = vcmp.eq.f32.partialorder %v1076_v6, 2.0 }
 0x2a8   : > { %vm3415_vm13 = vmand %vm1096_vm0, %vm4223_vm5  ;;  %vm1340_vm10 = vcmp.eq.f32.partialorder %v3339_v8, 2.0  ;;  %vm4227_vm3 = vnez %v4226_v0  ;;  %v1414_v59 = vadd.f32 %v1413_v25, %v1399_v52  ;;  %v1451_v28 = vadd.f32 %v1450_v40, %v1436_v50  ;;  %v1031_v16 = vpop.permute.xlu2 %1030  ;;  %v4230_v50 = vld [vmem:[#allocation4_spill] sm:$0xff] }
 0x2a9   : > { %vm1140_vm9 = vmand %vm1092_vm6, %vm4227_vm3  ;;  %vm1474_vm0 = vcmp.eq.f32.partialorder %v1076_v6, 3.0  ;;  %v1552_v43 = vadd.f32 %v1551_v63, %v1537_v13  ;;  %vm4229_vm6 = vnez %v4228_v30  ;;  %v4234_v13 = vld [vmem:[#allocation9_spill] sm:$0xff]  ;;  %v1589_v0 = vadd.f32 %v1588_v56, %v1574_v9  ;;  %v4262_v56 = vld [vmem:[#allocation7_spill] sm:$0xff] }
 0x2aa   : > { %v1156_v18 = vsel %vm1140_vm9, %v3164_v1, 0.0  ;;  %v1193_v38 = vsel %vm1140_vm9, 1.0, %v4082_v4  ;;  %vm1246_vm4 = vmand %vm1230_vm7, %vm4227_vm3  ;;  %vm4231_vm9 = vnez %v4230_v50  ;;  %v3473_v21 = vsel %vm3415_vm13, 1.0, %v4082_v4 }
 0x2ab   : > { %v1171_v53 = vadd.f32 %v1170_v24, %v1156_v18  ;;  %v1208_v33 = vadd.f32 %v1207_v10, %v1193_v38  ;;  %v1262_v27 = vsel %vm1246_vm4, %v3164_v1, 0.0  ;;  %v1299_v35 = vsel %vm1246_vm4, 1.0, %v4082_v4  ;;  %vm1384_vm15 = vmand %vm1336_vm1, %vm4229_vm6 }
 0x2ac   : > { %v1277_v25 = vadd.f32 %v1276_v44, %v1262_v27  ;;  %v1314_v40 = vadd.f32 %v1313_v15, %v1299_v35  ;;  %v1400_v61 = vsel %vm1384_vm15, %v3164_v1, 0.0  ;;  %v1437_v52 = vsel %vm1384_vm15, 1.0, %v4082_v4  ;;  %vm1522_vm7 = vmand %vm1474_vm0, %vm4231_vm9  ;;  %v4295_v15 = vld [vmem:[#allocation12_spill] sm:$0xff] }
 0x2ad   : > { %vm3441_vm3 = vmand %vm1234_vm2, %vm4223_vm5  ;;  %v1415_v24 = vadd.f32 %v1414_v59, %v1400_v61  ;;  %v1452_v6 = vadd.f32 %v1451_v28, %v1437_v52  ;;  %v1538_v10 = vsel %vm1522_vm7, %v3164_v1, 0.0  ;;  %v1575_v44 = vsel %vm1522_vm7, 1.0, %v4082_v4  ;;  %v4239_v28 = vld [vmem:[#allocation28_spill] sm:$0xff]  ;;  %v4241_v61 = vld [vmem:[#allocation29_spill] sm:$0xff] }
 0x2ae   : > { %vm4235_vm1 = vnez %v4234_v13  ;;  %v1553_v57 = vadd.f32 %v1552_v43, %v1538_v10  ;;  %v1083_v18 = vsub.f32 %v2616_v41, %v1051_v23  ;;  %v1078_v38 = vsub.f32 %v2616_v41, %v1031_v16  ;;  %v4242_v23 = vld [vmem:[#allocation10_spill] sm:$0xff] }
 0x2af   : > { %vm3451_vm15 = vmand %vm1340_vm10, %vm4235_vm1  ;;  %v4238_v1 = vsel %vm2862_vm8, %v3140_v47, 0.0  ;;  %v1209_v27 = vadd.f32 %v1208_v33, %v4239_v28  ;;  %v4240_v35 = vsel %vm4115_vm12, %v3140_v47, 0.0  ;;  %v1315_v52 = vadd.f32 %v1314_v40, %v4241_v61 }
 0x2b0   : > { %v1172_v59 = vadd.f32 %v1171_v53, %v4238_v1  ;;  %v1278_v30 = vadd.f32 %v1277_v25, %v4240_v35  ;;  %vm4243_vm8 = vnez %v4242_v23  ;;  %vm4244_vm5 = vcmp.eq.f32.partialorder %v3339_v8, 3.0  ;;  %v1063_v8 = vpop.permute.xlu0 %1062  ;;  %v4247_v25 = vld [vmem:[#allocation14_spill] sm:$0xff]  ;;  %v1043_v35 = vpop.permute.xlu2 %1042 }
 0x2b1   : > { %vm3479_vm2 = vmand %vm4244_vm5, %vm4243_vm8  ;;  %v1590_v9 = vadd.f32 %v1589_v0, %v1575_v44  ;;  %vm1099_vm12 = vcmp.eq.f32.partialorder %v1083_v18, 0.0  ;;  %v3489_v16 = vsel %vm3441_vm3, 1.0, %v4082_v4  ;;  %vm1237_vm10 = vcmp.eq.f32.partialorder %v1083_v18, 1.0  ;;  %v4252_v44 = vld [vmem:[#allocation30_spill] sm:$0xff] }
 0x2b2   : > { %v3497_v33 = vsel %vm3451_vm15, 1.0, %v4082_v4  ;;  %vm4248_vm4 = vnez %v4247_v25  ;;  %v4249_v40 = vmov 0  ;;  %vm1094_vm6 = vcmp.eq.f32.partialorder %v1078_v38, 0.0 }
 0x2b3   : > { %vm3501_vm0 = vmand %vm1099_vm12, %vm4248_vm4  ;;  %v4251_v50 = vsel %vm4117_vm11, %v3140_v47, 0.0  ;;  %v1453_v13 = vadd.f32 %v1452_v6, %v4252_v44  ;;  %v3516_v1 = vsel %vm3479_vm2, 1.0, %v4082_v4  ;;  %vm1232_vm9 = vcmp.eq.f32.partialorder %v1078_v38, 1.0  ;;  %v4257_v6 = vld [vmem:[#allocation31_spill] sm:$0xff] }
 0x2b4   : > { %v4250_v40 = vsel %vm3501_vm0, 4294967295, %v4249_v40  ;;  %v1416_v10 = vadd.f32 %v1415_v24, %v4251_v50  ;;  %vm4253_vm7 = vnez %v4100_v14  ;;  %vm3524_vm11 = vmand %vm1237_vm10, %vm4248_vm4  ;;  %vm1338_vm8 = vcmp.eq.f32.partialorder %v1078_v38, 2.0  ;;  %v4260_v14 = vld [vmem:[#allocation6_spill] sm:$0xff] }
 0x2b5   : > { %v4254_v28 = vsel %vm4253_vm7, %v3140_v47, 0.0  ;;  %v1591_v61 = vadd.f32 %v1590_v9, %v4257_v6  ;;  %v3530_v23 = vsub.f32 %v2616_v41, %v1063_v8  ;;  %v3538_v47 = vsel %vm3501_vm0, 1.0, %v4082_v4 }
 0x2b6   : > { %v1554_v34 = vadd.f32 %v1553_v57, %v4254_v28  ;;  %v4258_v57 = vld [vmem:[#allocation5_spill] sm:$0xff]  ;;  %vm1476_vm4 = vcmp.eq.f32.partialorder %v1078_v38, 3.0  ;;  %v1081_v25 = vsub.f32 %v2616_v41, %v1043_v35  ;;  %vm4266_vm1 = vcmp.eq.f32.partialorder %v1083_v18, 2.0  ;;  %v4270_v35 = vld [vmem:[#allocation32_spill] sm:$0xff]  ;;  %v4326_v38 = vld [vmem:[#allocation19_spill] sm:$0xff] }
 0x2b7   : > { %vm4259_vm12 = vnez %v4258_v57  ;;  %v4294_v63 = vsel %vm3451_vm15, %v3245_v49, 0.0 }
 0x2b8   : > { %vm1142_vm10 = vmand %vm1094_vm6, %vm4259_vm12  ;;  %vm4261_vm6 = vnez %v4260_v14 }
 0x2b9   : > { %v1158_v9 = vsel %vm1142_vm10, %v3193_v22, 0.0  ;;  %v1195_v8 = vsel %vm1142_vm10, 1.0, %v4082_v4  ;;  %vm1248_vm7 = vmand %vm1232_vm9, %vm4259_vm12  ;;  %vm4263_vm9 = vnez %v4262_v56 }
 0x2ba   : > { %v1173_v50 = vadd.f32 %v1172_v59, %v1158_v9  ;;  %v1210_v44 = vadd.f32 %v1209_v27, %v1195_v8  ;;  %v1264_v28 = vsel %vm1248_vm7, %v3193_v22, 0.0  ;;  %v1301_v6 = vsel %vm1248_vm7, 1.0, %v4082_v4  ;;  %vm1386_vm5 = vmand %vm1338_vm8, %vm4261_vm6  ;;  %v4264_v59 = vld [vmem:[#allocation15_spill] sm:$0xff] }
 0x2bb   : > { %v1279_v0 = vadd.f32 %v1278_v30, %v1264_v28  ;;  %v1316_v53 = vadd.f32 %v1315_v52, %v1301_v6  ;;  %v1402_v57 = vsel %vm1386_vm5, %v3193_v22, 0.0  ;;  %v1439_v43 = vsel %vm1386_vm5, 1.0, %v4082_v4  ;;  %vm1524_vm12 = vmand %vm1476_vm4, %vm4263_vm9  ;;  %v4271_v28 = vld [vmem:[#allocation16_spill] sm:$0xff] }
 0x2bc   : > { %vm4265_vm10 = vnez %v4264_v59  ;;  %v4269_v30 = vsel %vm2907_vm14, %v3198_v39, 0.0  ;;  %v1211_v14 = vadd.f32 %v1210_v44, %v4270_v35  ;;  %v1417_v9 = vadd.f32 %v1416_v10, %v1402_v57  ;;  %v4281_v10 = vld [vmem:[#allocation34_spill] sm:$0xff] }
 0x2bd   : > { %vm3563_vm0 = vmand %vm4266_vm1, %vm4265_vm10  ;;  %v1174_v52 = vadd.f32 %v1173_v50, %v4269_v30  ;;  %v1454_v8 = vadd.f32 %v1453_v13, %v1439_v43  ;;  %vm4272_vm8 = vnez %v4271_v28  ;;  %vm4273_vm5 = vcmp.eq.f32.partialorder %v1083_v18, 3.0 }
 0x2be   : > { %vm3575_vm4 = vmand %vm4273_vm5, %vm4272_vm8  ;;  %vm4276_vm1 = vnez %v4105_v11  ;;  %v1317_v59 = vadd.f32 %v1316_v53, %v4278_v7  ;;  %v1540_v50 = vsel %vm1524_vm12, %v3193_v22, 0.0  ;;  %v1577_v44 = vsel %vm1524_vm12, 1.0, %v4082_v4 }
 0x2bf   : > { %v4277_v56 = vsel %vm4276_vm1, %v3198_v39, 0.0  ;;  %vm4279_vm14 = vnez %v4108_v45  ;;  %v1455_v13 = vadd.f32 %v1454_v8, %v4281_v10  ;;  %v1555_v57 = vadd.f32 %v1554_v34, %v1540_v50 }
 0x2c0   : > { %v1280_v6 = vadd.f32 %v1279_v0, %v4277_v56  ;;  %v4280_v43 = vsel %vm4279_vm14, %v3198_v39, 0.0  ;;  %v1592_v30 = vadd.f32 %v1591_v61, %v1577_v44  ;;  %v1269_v11 = vsel %vm3524_vm11, %v3312_v37, 0.0  ;;  %v4282_v0 = vld [vmem:[#allocation20_spill] sm:$0xff] }
 0x2c1   : > { %v1418_v18 = vadd.f32 %v1417_v9, %v4280_v43  ;;  %v1306_v53 = vsel %vm3524_vm11, 1.0, %v4082_v4  ;;  %v1407_v22 = vsel %vm3563_vm0, %v3312_v37, 0.0  ;;  %v3603_v45 = vsel %vm3563_vm0, 1.0, %v4082_v4  ;;  %v4289_v9 = vld [vmem:[#allocation35_spill] sm:$0xff] }
 0x2c2   : > { %vm4283_vm7 = vnez %v4282_v0  ;;  %vm4284_vm6 = vcmp.eq.f32.partialorder %v3530_v23, 0.0  ;;  %v1545_v24 = vsel %vm3575_vm4, %v3312_v37, 0.0  ;;  %v3619_v61 = vsel %vm3575_vm4, 1.0, %v4082_v4 }
 0x2c3   : > { %vm3609_vm9 = vmand %vm4284_vm6, %vm4283_vm7  ;;  %vm4287_vm0 = vnez %v4114_v20  ;;  %v1593_v8 = vadd.f32 %v1592_v30, %v4289_v9  ;;  %vm1097_vm11 = vcmp.eq.f32.partialorder %v1081_v25, 0.0  ;;  %v4290_v28 = vsel %vm3415_vm13, %v3245_v49, 0.0 }
 0x2c4   : > { %v4288_v27 = vsel %vm4287_vm0, %v3198_v39, 0.0  ;;  %v1175_v56 = vadd.f32 %v1174_v52, %v4290_v28  ;;  %v1212_v7 = vadd.f32 %v1211_v14, %v3473_v21  ;;  %vm1235_vm12 = vcmp.eq.f32.partialorder %v1081_v25, 1.0  ;;  %v4292_v21 = vld [vmem:[#allocation11_spill] sm:$0xff]  ;;  %v4297_v28 = vld [vmem:[#allocation13_spill] sm:$0xff] }
 0x2c5   : > { %v1556_v35 = vadd.f32 %v1555_v57, %v4288_v27  ;;  %v1166_v50 = vsel %vm3609_vm9, %v3329_v58, 0.0  ;;  %vm1240_vm10 = vcmp.eq.f32.partialorder %v3530_v23, 1.0  ;;  %v4291_v20 = vsel %vm3441_vm3, %v3245_v49, 0.0 }
 0x2c6   : > { %v1281_v39 = vadd.f32 %v1280_v6, %v4291_v20  ;;  %v1318_v44 = vadd.f32 %v1317_v59, %v3489_v16  ;;  %v3643_v60 = vsel %vm3609_vm9, 1.0, %v4082_v4  ;;  %vm1346_vm13 = vcmp.eq.f32.partialorder %v3530_v23, 2.0 }
 0x2c7   : > { %vm4293_vm8 = vnez %v4292_v21  ;;  %vm1341_vm1 = vcmp.eq.f32.partialorder %v1081_v25, 2.0  ;;  %v1419_v52 = vadd.f32 %v1418_v18, %v4294_v63  ;;  %v1456_v6 = vadd.f32 %v1455_v13, %v3497_v33  ;;  %v4305_v63 = vld [vmem:[#allocation36_spill] sm:$0xff] }
 0x2c8   : > { %vm1145_vm5 = vmand %vm1097_vm11, %vm4293_vm8  ;;  %vm1479_vm14 = vcmp.eq.f32.partialorder %v1081_v25, 3.0  ;;  %vm4296_vm6 = vnez %v4295_v15  ;;  %vm4298_vm0 = vnez %v4297_v28 }
 0x2c9   : > { %v1161_v14 = vsel %vm1145_vm5, %v3292_v36, 0.0  ;;  %v1198_v16 = vsel %vm1145_vm5, 1.0, %v4082_v4  ;;  %vm1251_vm3 = vmand %vm1235_vm12, %vm4293_vm8  ;;  %vm4301_vm12 = vnez %v4122_v29  ;;  %vm4303_vm8 = vnez %v4127_v2  ;;  %v4309_v2 = vld [vmem:[#allocation37_spill] sm:$0xff] }
 0x2ca   : > { %v1176_v59 = vadd.f32 %v1175_v56, %v1161_v14  ;;  %v1213_v43 = vadd.f32 %v1212_v7, %v1198_v16  ;;  %v1267_v10 = vsel %vm1251_vm3, %v3292_v36, 0.0  ;;  %v1304_v57 = vsel %vm1251_vm3, 1.0, %v4082_v4  ;;  %vm1389_vm15 = vmand %vm1341_vm1, %vm4296_vm6 }
 0x2cb   : > { %v1282_v18 = vadd.f32 %v1281_v39, %v1267_v10  ;;  %v1319_v30 = vadd.f32 %v1318_v44, %v1304_v57  ;;  %v1405_v27 = vsel %vm1389_vm15, %v3292_v36, 0.0  ;;  %v1442_v9 = vsel %vm1389_vm15, 1.0, %v4082_v4  ;;  %vm3665_vm11 = vmand %vm1479_vm14, %vm4298_vm0  ;;  %v1055_v39 = vpop.permute.xlu2 %1054 }
 0x2cc   : > { %v4302_v25 = vsel %vm4301_vm12, %v3223_v51, 0.0  ;;  %v1214_v56 = vadd.f32 %v1213_v43, %v3091_v19  ;;  %v1420_v7 = vadd.f32 %v1419_v52, %v1405_v27  ;;  %v1457_v20 = vadd.f32 %v1456_v6, %v1442_v9  ;;  %vm3699_vm1 = vmand %vm1240_vm10, %vm4283_vm7 }
 0x2cd   : > { %v1177_v13 = vadd.f32 %v1176_v59, %v4302_v25  ;;  %v4304_v44 = vsel %vm4303_vm8, %v3223_v51, 0.0  ;;  %v1320_v14 = vadd.f32 %v1319_v30, %v4305_v63  ;;  %v1543_v16 = vsel %vm3665_vm11, %v3292_v36, 0.0 }
 0x2ce   : > { %v1283_v21 = vadd.f32 %v1282_v18, %v4304_v44  ;;  %v4306_v29 = vsel %vm3479_vm2, %v3245_v49, 0.0  ;;  %vm4307_vm5 = vnez %v4135_v31  ;;  %v1458_v6 = vadd.f32 %v1457_v20, %v4309_v2  ;;  %v4314_v18 = vld [vmem:[#allocation21_spill] sm:$0xff]  ;;  %v4336_v2 = vld [vmem:[#allocation39_spill] sm:$0xff] }
 0x2cf   : > { %v1557_v59 = vadd.f32 %v1556_v35, %v4306_v29  ;;  %v4308_v19 = vsel %vm4307_vm5, %v3223_v51, 0.0  ;;  %v1580_v43 = vsel %vm3665_vm11, 1.0, %v4082_v4  ;;  %v1594_v10 = vadd.f32 %v1593_v8, %v3516_v1 }
 0x2d0   : > { %v1421_v52 = vadd.f32 %v1420_v7, %v4308_v19  ;;  %v1084_v36 = vsub.f32 %v2616_v41, %v1055_v39  ;;  %vm4312_vm2 = vnez %v4250_v40  ;;  %v1215_v57 = vadd.f32 %v1214_v56, %v3538_v47  ;;  %v4324_v7 = vld [vmem:[#allocation18_spill] sm:$0xff] }
 0x2d1   : > { %v1558_v31 = vadd.f32 %v1557_v59, %v1543_v16  ;;  %v4313_v12 = vsel %vm4312_vm2, %v3312_v37, 0.0  ;;  %v1595_v15 = vadd.f32 %v1594_v10, %v1580_v43  ;;  %v1284_v1 = vadd.f32 %v1283_v21, %v1269_v11  ;;  %v4320_v11 = vld [vmem:[#allocation38_spill] sm:$0xff] }
 0x2d2   : > { %v1178_v35 = vadd.f32 %v1177_v13, %v4313_v12  ;;  %v1321_v8 = vadd.f32 %v1320_v14, %v1306_v53  ;;  %v1422_v0 = vadd.f32 %v1421_v52, %v1407_v22  ;;  %vm4315_vm3 = vnez %v4314_v18  ;;  %v4321_v22 = vld [vmem:[#allocation17_spill] sm:$0xff]  ;;  %v4328_v37 = vld [vmem:[#allocation22_spill] sm:$0xff] }
 0x2d3   : > { %vm3713_vm7 = vmand %vm1346_vm13, %vm4315_vm3  ;;  %vm4318_vm10 = vnez %v4141_v32  ;;  %vm1100_vm14 = vcmp.eq.f32.partialorder %v1084_v36, 0.0  ;;  %vm1238_vm6 = vcmp.eq.f32.partialorder %v1084_v36, 1.0  ;;  %vm1344_vm15 = vcmp.eq.f32.partialorder %v1084_v36, 2.0  ;;  %v4323_v32 = vld [vmem:[#allocation26_spill] sm:$0xff]  ;;  %v1067_v10 = vpop.permute.xlu2 %1066 }
 0x2d4   : > { %v4319_v40 = vsel %vm4318_vm10, %v3223_v51, 0.0  ;;  %v1272_v47 = vsel %vm3699_vm1, %v3329_v58, 0.0  ;;  %v1596_v53 = vadd.f32 %v1595_v15, %v4320_v11  ;;  %vm4322_vm0 = vnez %v4321_v22  ;;  %v4342_v11 = vld [vmem:[#allocation41_spill] sm:$0xff] }
 0x2d5   : > { %v1559_v27 = vadd.f32 %v1558_v31, %v4319_v40  ;;  %vm1148_vm13 = vmand %vm1100_vm14, %vm4322_vm0  ;;  %v1459_v9 = vadd.f32 %v1458_v6, %v3603_v45  ;;  %vm1482_vm11 = vcmp.eq.f32.partialorder %v1084_v36, 3.0  ;;  %vm1484_vm12 = vcmp.eq.f32.partialorder %v3530_v23, 3.0 }
 0x2d6   : > { %v1164_v51 = vsel %vm1148_vm13, %v4323_v32, 0.0  ;;  %v1201_v28 = vsel %vm1148_vm13, 1.0, %v4082_v4  ;;  %vm1254_vm8 = vmand %vm1238_vm6, %vm4322_vm0  ;;  %vm4325_vm5 = vnez %v4324_v7  ;;  %vm4327_vm3 = vnez %v4326_v38  ;;  %v4353_v38 = vld [vmem:[#allocation42_spill] sm:$0xff] }
 0x2d7   : > { %v1560_v33 = vadd.f32 %v1559_v27, %v1545_v24  ;;  %v1179_v25 = vadd.f32 %v1178_v35, %v1164_v51  ;;  %v1216_v13 = vadd.f32 %v1215_v57, %v1201_v28  ;;  %v1270_v56 = vsel %vm1254_vm8, %v4323_v32, 0.0  ;;  %vm1392_vm2 = vmand %vm1344_vm15, %vm4325_vm5 }
 0x2d8   : > { %v1307_v45 = vsel %vm1254_vm8, 1.0, %v4082_v4  ;;  %v1285_v20 = vadd.f32 %v1284_v1, %v1270_v56  ;;  %v1408_v44 = vsel %vm1392_vm2, %v4323_v32, 0.0  ;;  %v1445_v21 = vsel %vm1392_vm2, 1.0, %v4082_v4  ;;  %vm1530_vm4 = vmand %vm1482_vm11, %vm4327_vm3 }
 0x2d9   : > { %v1322_v39 = vadd.f32 %v1321_v8, %v1307_v45  ;;  %vm4329_vm10 = vnez %v4328_v37  ;;  %vm4332_vm6 = vnez %v4146_v62  ;;  %v1217_v16 = vadd.f32 %v1216_v13, %v3149_v42  ;;  %v4339_v42 = vld [vmem:[#allocation40_spill] sm:$0xff]  ;;  %v4349_v45 = vld [vmem:[#allocation25_spill] sm:$0xff] }
 0x2da   : > { %vm3751_vm14 = vmand %vm1484_vm12, %vm4329_vm10  ;;  %v4333_v63 = vsel %vm4332_vm6, %v3260_v3, 0.0  ;;  %v1423_v29 = vadd.f32 %v1422_v0, %v1408_v44  ;;  %v1460_v59 = vadd.f32 %v1459_v9, %v1445_v21  ;;  %vm4334_vm15 = vnez %v4153_v54 }
 0x2db   : > { %v1180_v14 = vadd.f32 %v1179_v25, %v4333_v63  ;;  %v4335_v19 = vsel %vm4334_vm15, %v3260_v3, 0.0  ;;  %v1323_v23 = vadd.f32 %v1322_v39, %v4336_v2  ;;  %v1546_v6 = vsel %vm1530_vm4, %v4323_v32, 0.0  ;;  %v4356_v63 = vld [vmem:[#allocation44_spill] sm:$0xff]  ;;  %v4360_v2 = vld [vmem:[#allocation45_spill] sm:$0xff] }
 0x2dc   : > { %v1286_v52 = vadd.f32 %v1285_v20, %v4335_v19  ;;  %v1583_v43 = vsel %vm1530_vm4, 1.0, %v4082_v4  ;;  %vm4337_vm0 = vnez %v4158_v46  ;;  %v1461_v36 = vadd.f32 %v1460_v59, %v4339_v42  ;;  %v4357_v19 = vld [vmem:[#allocation43_spill] sm:$0xff] }
 0x2dd   : > { %v4338_v62 = vsel %vm4337_vm0, %v3260_v3, 0.0  ;;  %v1561_v12 = vadd.f32 %v1560_v33, %v1546_v6  ;;  %v1597_v54 = vadd.f32 %v1596_v53, %v3619_v61  ;;  %v1309_v35 = vsel %vm3699_vm1, 1.0, %v4082_v4  ;;  %v4347_v33 = vld [vmem:[#allocation24_spill] sm:$0xff] }
 0x2de   : > { %v1424_v31 = vadd.f32 %v1423_v29, %v4338_v62  ;;  %v1410_v57 = vsel %vm3713_vm7, %v3329_v58, 0.0  ;;  %v1447_v46 = vsel %vm3713_vm7, 1.0, %v4082_v4  ;;  %v1548_v15 = vsel %vm3751_vm14, %v3329_v58, 0.0 }
 0x2df   : > { %vm4340_vm13 = vnez %v4163_v5  ;;  %v1598_v8 = vadd.f32 %v1597_v54, %v1583_v43  ;;  %v1087_v49 = vsub.f32 %v2616_v41, %v1067_v10  ;;  %v1181_v0 = vadd.f32 %v1180_v14, %v1166_v50  ;;  %v4343_v41 = vld [vmem:[#allocation23_spill] sm:$0xff] }
 0x2e0   : > { %v4341_v61 = vsel %vm4340_vm13, %v3260_v3, 0.0  ;;  %v1218_v18 = vadd.f32 %v1217_v16, %v3643_v60  ;;  %v1287_v30 = vadd.f32 %v1286_v52, %v1272_v47  ;;  %v1324_v40 = vadd.f32 %v1323_v23, %v1309_v35  ;;  %v4346_v50 = vld [vmem:[#allocation27_spill] sm:$0xff] }
 0x2e1   : > { %v1562_v1 = vadd.f32 %v1561_v12, %v4341_v61  ;;  %v1425_v27 = vadd.f32 %v1424_v31, %v1410_v57  ;;  %v1599_v53 = vadd.f32 %v1598_v8, %v4342_v11  ;;  %vm1103_vm1 = vcmp.eq.f32.partialorder %v1087_v49, 0.0  ;;  %v4361_v57 = vld [vmem:[#allocation46_spill] sm:$0xff] }
 0x2e2   : > { %vm1241_vm7 = vcmp.eq.f32.partialorder %v1087_v49, 1.0  ;;  %vm1347_vm11 = vcmp.eq.f32.partialorder %v1087_v49, 2.0  ;;  %v1585_v5 = vsel %vm3751_vm14, 1.0, %v4082_v4  ;;  %vm4344_vm12 = vnez %v4343_v41 }
 0x2e3   : > { %vm1151_vm8 = vmand %vm1103_vm1, %vm4344_vm12  ;;  %v1462_v3 = vadd.f32 %v1461_v36, %v1447_v46  ;;  %vm1485_vm9 = vcmp.eq.f32.partialorder %v1087_v49, 3.0  ;;  %v1563_v58 = vadd.f32 %v1562_v1, %v1548_v15  ;;  %vm4345_vm5 = vnez %v4186_v26 }
 0x2e4   : > { %v1550_v34 = vsel %vm4345_vm5, %v3282_v48, 0.0  ;;  %v1167_v60 = vsel %vm1151_vm8, %v4346_v50, 0.0  ;;  %v1204_v47 = vsel %vm1151_vm8, 1.0, %v4082_v4  ;;  %vm1257_vm2 = vmand %vm1241_vm7, %vm4344_vm12  ;;  %v1600_v22 = vadd.f32 %v1599_v53, %v1585_v5 }
 0x2e5   : > { %v1182_v9 = vadd.f32 %v1181_v0, %v1167_v60  ;;  %v1219_v32 = vadd.f32 %v1218_v18, %v1204_v47  ;;  %v1273_v51 = vsel %vm1257_vm2, %v4346_v50, 0.0  ;;  %v1310_v28 = vsel %vm1257_vm2, 1.0, %v4082_v4 }
 0x2e6   : > { %vm4348_vm3 = vnez %v4347_v33  ;;  %v1288_v26 = vadd.f32 %v1287_v30, %v1273_v51  ;;  %v1325_v25 = vadd.f32 %v1324_v40, %v1310_v28  ;;  %vm4350_vm10 = vnez %v4349_v45 }
 0x2e7   : > { %vm1395_vm4 = vmand %vm1347_vm11, %vm4348_vm3  ;;  %vm4351_vm6 = vnez %v4171_v55  ;;  %v1220_v39 = vadd.f32 %v1219_v32, %v3230_v17  ;;  %vm4354_vm15 = vnez %v4353_v38  ;;  %vm4358_vm0 = vnez %v4357_v19 }
 0x2e8   : > { %v1411_v13 = vsel %vm1395_vm4, %v4346_v50, 0.0  ;;  %v1448_v56 = vsel %vm1395_vm4, 1.0, %v4082_v4  ;;  %vm1533_vm14 = vmand %vm1485_vm9, %vm4350_vm10  ;;  %v4352_v7 = vsel %vm4351_vm6, %v3282_v48, 0.0  ;;  %v4355_v37 = vsel %vm4354_vm15, %v3282_v48, 0.0 }
 0x2e9   : > { %v1183_v20 = vadd.f32 %v1182_v9, %v4352_v7  ;;  %v1426_v44 = vadd.f32 %v1425_v27, %v1411_v13  ;;  %v1463_v21 = vadd.f32 %v1462_v3, %v1448_v56  ;;  %v1289_v24 = vadd.f32 %v1288_v26, %v4355_v37 }
 0x2ea   : > { %v1326_v14 = vadd.f32 %v1325_v25, %v4356_v63  ;;  %v1549_v16 = vsel %vm1533_vm14, %v4346_v50, 0.0  ;;  %v1586_v29 = vsel %vm1533_vm14, 1.0, %v4082_v4  ;;  %v1221_v55 = vrot.slane %v1220_v39, 4 }
 0x2eb   : > { %v1184_v59 = vrot.slane %v1183_v20, 4  ;;  %v4359_v52 = vsel %vm4358_vm0, %v3282_v48, 0.0  ;;  %v1464_v23 = vadd.f32 %v1463_v21, %v4360_v2  ;;  %v1290_v6 = vrot.slane %v1289_v24, 4 }
 0x2ec   : > { %v1427_v17 = vadd.f32 %v1426_v44, %v4359_v52  ;;  %v1327_v43 = vrot.slane %v1326_v14, 4  ;;  %v1564_v10 = vadd.f32 %v1563_v58, %v1549_v16  ;;  %v1601_v62 = vadd.f32 %v1600_v22, %v1586_v29 }
 0x2ed   : > { %v1185_v31 = vadd.f32 %v1184_v59, %v1183_v20  ;;  %v1222_v42 = vadd.f32 %v1221_v55, %v1220_v39  ;;  %v1465_v12 = vrot.slane %v1464_v23, 4  ;;  %v1291_v54 = vadd.f32 %v1290_v6, %v1289_v24 }
 0x2ee   : > { %v1428_v36 = vrot.slane %v1427_v17, 4  ;;  %v1328_v35 = vadd.f32 %v1327_v43, %v1326_v14  ;;  %v1565_v4 = vadd.f32 %v1564_v10, %v1550_v34  ;;  %v1602_v46 = vadd.f32 %v1601_v62, %v4361_v57 }
 0x2ef   : > { %v1186_v15 = vrot.slane %v1185_v31, 2  ;;  %v1223_v61 = vrot.slane %v1222_v42, 2  ;;  %v1466_v48 = vadd.f32 %v1465_v12, %v1464_v23  ;;  %v1292_v8 = vrot.slane %v1291_v54, 2 }
 0x2f0   : > { %v1429_v1 = vadd.f32 %v1428_v36, %v1427_v17  ;;  %v1329_v49 = vrot.slane %v1328_v35, 2  ;;  %v1566_v0 = vrot.slane %v1565_v4, 4  ;;  %v1603_v18 = vrot.slane %v1602_v46, 4 }
 0x2f1   : > { %v1187_v30 = vadd.f32 %v1186_v15, %v1185_v31  ;;  %v1467_v27 = vrot.slane %v1466_v48, 2  ;;  %v1293_v11 = vadd.f32 %v1292_v8, %v1291_v54  ;;  %v1224_v3 = vadd.f32 %v1223_v61, %v1222_v42 }
 0x2f2   : > { %v1430_v40 = vrot.slane %v1429_v1, 2  ;;  %v1567_v53 = vadd.f32 %v1566_v0, %v1565_v4  ;;  %v1604_v5 = vadd.f32 %v1603_v18, %v1602_v46  ;;  %v1330_v50 = vadd.f32 %v1329_v49, %v1328_v35 }
 0x2f3   : > { %v1188_v41 = vrot.slane %v1187_v30, 1  ;;  %v1294_v34 = vrot.slane %v1293_v11, 1  ;;  %vm1609_vm13 = vcmask 1040384   ;;  %v1468_v32 = vadd.f32 %v1467_v27, %v1466_v48 }
 0x2f4   : > { %v1431_v58 = vadd.f32 %v1430_v40, %v1429_v1  ;;  %v1568_v60 = vrot.slane %v1567_v53, 2  ;;  %v1605_v47 = vrot.slane %v1604_v5, 2  ;;  %vm1611_vm1 = vcmask 1041408  }
 0x2f5   : > { %v1189_v22 = vadd.f32 %v1188_v41, %v1187_v30  ;;  %v1295_v51 = vadd.f32 %v1294_v34, %v1293_v11  ;;  %v1225_v26 = vrot.slane %v1224_v3, 1  ;;  %v1331_v13 = vrot.slane %v1330_v50, 1 }
 0x2f6   : > { %v1432_v9 = vrot.slane %v1431_v58, 1  ;;  %v1569_v28 = vadd.f32 %v1568_v60, %v1567_v53  ;;  %v1606_v33 = vadd.f32 %v1605_v47, %v1604_v5  ;;  %vm1613_vm7 = vcmask 1042432  }
 0x2f7   : > { %v1610_v45 = vsel %vm1609_vm13, %v1189_v22, %v1295_v51  ;;  %v1469_v7 = vrot.slane %v1468_v32, 1  ;;  %vm1615_vm11 = vcmask 1043456   ;;  %vm1617_vm12 = vcmask 1044480  }
 0x2f8   : > { %v1433_v25 = vadd.f32 %v1432_v9, %v1431_v58  ;;  %v1570_v56 = vrot.slane %v1569_v28, 1  ;;  %v1607_v44 = vrot.slane %v1606_v33, 1  ;;  %v1226_v21 = vadd.f32 %v1225_v26, %v1224_v3 }
 0x2f9   : > { %vm1619_vm8 = vcmask 1045504   ;;  %v1332_v38 = vadd.f32 %v1331_v13, %v1330_v50  ;;  %vm1621_vm9 = vcmask 1046528   ;;  %v1470_v24 = vadd.f32 %v1469_v7, %v1468_v32 }
 0x2fa   : > { %v1612_v20 = vsel %vm1611_vm1, %v1610_v45, %v1433_v25  ;;  %v1571_v39 = vadd.f32 %v1570_v56, %v1569_v28  ;;  %v1608_v14 = vadd.f32 %v1607_v44, %v1606_v33 }
 0x2fc   : > { %v1614_v37 = vsel %vm1613_vm7, %v1612_v20, %v1571_v39 }
 0x2fd   : > { %v1616_v63 = vsel %vm1615_vm11, %v1614_v37, %v1226_v21 }
 0x2fe   : > { %v1618_v16 = vsel %vm1617_vm12, %v1616_v63, %v1332_v38 }
 0x2ff   : > { %v1620_v29 = vsel %vm1619_vm8, %v1618_v16, %v1470_v24 }
 0x300   : > { %v1622_v59 = vsel %vm1621_vm9, %v1620_v29, %v1608_v14 }
 0x301   : > { %1623 = vst [vmem:[%s158_s21] sm:$0xff] %v1622_v59 }
 0x302 PF: > { %s12_s9 = sadd.s32 1, %s1836_s9  }
 0x303   : > { %p9_p4 = scmp.ge.s32.totalorder %s12_s9, 4  }
 0x305   :  { %11 = sbr.rel (!%p9_p4) target bundleno = 1 (0x1), region = 61 }

</bundles_post_ra>
